<compile_context>
chip_gen: v7x
topology: tpu7x:2x2x1
jax: 0.10.0
libtpu: 0.0.40
codegen_flags: <defaults>
</compile_context>

<pallas_src>
import functools

import numpy as np
import jax
import jax.numpy as jnp
from jax.experimental import pallas as pl


# ----------------------------------------------------------------------------
# Forward math, written once over a `param(name)` getter so the exact same
# code is used by the Pallas kernel (getter = static ref slices) and by the
# pure-JAX reference (getter = slab slices).
# ----------------------------------------------------------------------------
def _ope_math(xcat, param, *, n_spec, n_shared, c_out, n_cgc):
    def linear(x, name):
        return (jnp.dot(x, param(name + "_w"),
                        preferred_element_type=jnp.float32)
                + param(name + "_b"))

    def softmax(y):
        y = y - jnp.max(y, axis=-1, keepdims=True)
        e = jnp.exp(y)
        return e / jnp.sum(e, axis=-1, keepdims=True)

    e_tot = 2 * n_spec + n_shared
    g1_w = n_spec + n_shared

    # Fused embeddings: [x | x1 | x2] @ blockdiag -> [emb_full|emb_t1|emb_t2].
    xcat = linear(xcat, "emb")

    out1 = out2 = None
    for li in range(n_cgc):
        if_last = li == n_cgc - 1
        # All experts of the layer in two matmuls (dropout = identity).
        h = jnp.maximum(linear(xcat, f"cgc{li}_l1"), 0.0)      # (B, E*H)
        eo = linear(h, f"cgc{li}_l2")                          # (B, E*C)
        # All gates of the layer in one matmul.
        gr = linear(xcat, f"cgc{li}_g")                        # (B, 2*g1 [+E])
        g1 = softmax(gr[:, 0:g1_w])
        g2 = softmax(gr[:, g1_w:2 * g1_w])

        def expert(e):
            return eo[:, e * c_out:(e + 1) * c_out]

        def combine(gate, idx):
            acc = expert(idx[0]) * gate[:, 0:1]
            for k in range(1, len(idx)):
                acc = acc + expert(idx[k]) * gate[:, k:k + 1]
            return acc

        # Packed expert order: [task1 x n_spec, task2 x n_spec, shared].
        idx_t1 = list(range(n_spec)) + list(range(2 * n_spec, e_tot))
        idx_t2 = list(range(n_spec, 2 * n_spec)) + list(range(2 * n_spec, e_tot))
        out1 = combine(g1, idx_t1)
        out2 = combine(g2, idx_t2)
        if not if_last:
            gs = softmax(gr[:, 2 * g1_w:2 * g1_w + e_tot])
            outs = combine(gs, list(range(e_tot)))
            xcat = jnp.concatenate([outs, out1, out2], axis=1)

    # Both towers fused block-diagonally; merged (B, 2) sigmoid head.
    xt = jnp.concatenate([out1, out2], axis=1)
    ht = jnp.maximum(linear(xt, "tw1"), 0.0)                   # dropout = id
    return jax.nn.sigmoid(linear(ht, "tw2"))


# ----------------------------------------------------------------------------
# The fused kernel: x (batch-padded, concatenated) + one param slab -> (B, 2).
# ----------------------------------------------------------------------------
def _ope_kernel(x_ref, p_ref, o_ref, *, layout, n_spec, n_shared, c_out, n_cgc):
    def param(name):
        r0, nr, nc = layout[name]
        return p_ref[r0:r0 + nr, 0:nc]          # static slice of the slab

    out = _ope_math(x_ref[...], param, n_spec=n_spec, n_shared=n_shared,
                    c_out=c_out, n_cgc=n_cgc)
    o_ref[...] = out.astype(o_ref.dtype)


def ope_forward(slab, layout, x, x1, x2, cfg):
    batch = x.shape[0]
    bpad = -(-batch // 8) * 8                   # pad batch to f32 sublane mult

    def pad(a):
        return jnp.pad(a, ((0, bpad - batch), (0, 0)))

    xcat = jnp.concatenate([pad(x), pad(x1), pad(x2)], axis=1)

    kernel = functools.partial(
        _ope_kernel,
        layout=layout,
        n_spec=cfg["num_specific_experts"],
        n_shared=cfg["num_shared_experts"],
        c_out=cfg["experts_out"],
        n_cgc=1 + cfg["num_CGC_layers"],
    )
    # Grid-free: inputs, the ~1 MB parameter slab and the merged (B, 2) output
    # are full-array VMEM blocks.
    # TODO(synk): for production batches (>=256) switch to a batch-tiled grid
    # (batch axis "parallel" for v7x dual-TC) with the slab as an index_map->0
    # full block, and re-derive VMEM budget against v7x's 64 MiB.
    out = pl.pallas_call(
        kernel,
        out_shape=jax.ShapeDtypeStruct((bpad, 2), jnp.float32),
    )(xcat, slab)
    return [out[:batch, 0:1], out[:batch, 1:2]]


def ope_reference(slab, layout, x, x1, x2, cfg):
    """Pure-JAX reference using the exact same packed parameters."""
    def param(name):
        r0, nr, nc = layout[name]
        return slab[r0:r0 + nr, 0:nc]

    xcat = jnp.concatenate([x, x1, x2], axis=1)
    out = _ope_math(xcat, param,
                    n_spec=cfg["num_specific_experts"],
                    n_shared=cfg["num_shared_experts"],
                    c_out=cfg["experts_out"],
                    n_cgc=1 + cfg["num_CGC_layers"])
    return [out[:, 0:1], out[:, 1:2]]


# ----------------------------------------------------------------------------
# Deterministic synthetic init (mimics nn.Linear uniform init) packed directly
# into block-structured fused matrices and one contiguous slab.
# ----------------------------------------------------------------------------
def _init_linear(key, din, dout):
    kw, kb = jax.random.split(key)
    lim = 1.0 / float(din) ** 0.5
    w = jax.random.uniform(kw, (din, dout), jnp.float32, -lim, lim)
    b = jax.random.uniform(kb, (1, dout), jnp.float32, -lim, lim)
    return np.asarray(w), np.asarray(b)


def _pack_embeddings(key, isf, ist1, ist2, ef, e1, e2):
    W = np.zeros((isf + ist1 + ist2, ef + e1 + e2), np.float32)
    b = np.zeros((1, ef + e1 + e2), np.float32)
    ks = jax.random.split(key, 3)
    w, bb = _init_linear(ks[0], isf, ef)
    W[0:isf, 0:ef] = w; b[:, 0:ef] = bb
    w, bb = _init_linear(ks[1], ist1, e1)
    W[isf:isf + ist1, ef:ef + e1] = w; b[:, ef:ef + e1] = bb
    w, bb = _init_linear(ks[2], ist2, e2)
    W[isf + ist1:, ef + e1:] = w; b[:, ef + e1:] = bb
    return {"emb_w": W, "emb_b": b}


def _pack_cgc_layer(key, df, d1, d2, n_spec, n_shared, c_out, hid, if_last):
    """One CGC layer: all experts + all gates as block-structured matrices.

    Kernel-side layer input is xcat = [x_full | x_task1 | x_task2] (width
    df+d1+d2).  Packed expert order on the output axis is
    [task1 experts, task2 experts, shared experts].
    """
    e_tot = 2 * n_spec + n_shared
    dk = df + d1 + d2
    W1 = np.zeros((dk, e_tot * hid), np.float32)
    b1 = np.zeros((1, e_tot * hid), np.float32)
    W2 = np.zeros((e_tot * hid, e_tot * c_out), np.float32)
    b2 = np.zeros((1, e_tot * c_out), np.float32)
    row_rng = ([(df, df + d1)] * n_spec        # task1 experts read x_task1
               + [(df + d1, dk)] * n_spec      # task2 experts read x_task2
               + [(0, df)] * n_shared)         # shared experts read x_full
    in_dim = [d1] * n_spec + [d2] * n_spec + [df] * n_shared
    ks = jax.random.split(key, e_tot + 3)
    for e in range(e_tot):
        k1, k2 = jax.random.split(ks[e])
        w1, eb1 = _init_linear(k1, in_dim[e], hid)
        w2, eb2 = _init_linear(k2, hid, c_out)
        r0, r1 = row_rng[e]
        W1[r0:r1, e * hid:(e + 1) * hid] = w1
        b1[:, e * hid:(e + 1) * hid] = eb1
        W2[e * hid:(e + 1) * hid, e * c_out:(e + 1) * c_out] = w2
        b2[:, e * c_out:(e + 1) * c_out] = eb2
    # Gates: column order [gate_task1 | gate_task2 | gate_shared (if not last)]
    # matching the PyTorch expert-stack order inside each gate's einsum.
    g1_w = n_spec + n_shared
    g_tot = 2 * g1_w + (0 if if_last else e_tot)
    WG = np.zeros((dk, g_tot), np.float32)
    bG = np.zeros((1, g_tot), np.float32)
    w, bb = _init_linear(ks[e_tot], d1, g1_w)
    WG[df:df + d1, 0:g1_w] = w; bG[:, 0:g1_w] = bb
    w, bb = _init_linear(ks[e_tot + 1], d2, g1_w)
    WG[df + d1:dk, g1_w:2 * g1_w] = w; bG[:, g1_w:2 * g1_w] = bb
    if not if_last:
        w, bb = _init_linear(ks[e_tot + 2], df, e_tot)
        WG[0:df, 2 * g1_w:] = w; bG[:, 2 * g1_w:] = bb
    return {"l1_w": W1, "l1_b": b1, "l2_w": W2, "l2_b": b2, "g_w": WG, "g_b": bG}


def _pack_towers(key, c_out, t_hid):
    W1 = np.zeros((2 * c_out, 2 * t_hid), np.float32)
    b1 = np.zeros((1, 2 * t_hid), np.float32)
    W2 = np.zeros((2 * t_hid, 2), np.float32)
    b2 = np.zeros((1, 2), np.float32)
    ks = jax.random.split(key, 4)
    w, bb = _init_linear(ks[0], c_out, t_hid)        # tower1 layer 1
    W1[0:c_out, 0:t_hid] = w; b1[:, 0:t_hid] = bb
    w, bb = _init_linear(ks[1], t_hid, 1)            # tower1 layer 2
    W2[0:t_hid, 0:1] = w; b2[:, 0:1] = bb
    w, bb = _init_linear(ks[2], c_out, t_hid)        # tower2 layer 1
    W1[c_out:, t_hid:] = w; b1[:, t_hid:] = bb
    w, bb = _init_linear(ks[3], t_hid, 1)            # tower2 layer 2
    W2[t_hid:, 1:2] = w; b2[:, 1:2] = bb
    return {"tw1_w": W1, "tw1_b": b1, "tw2_w": W2, "tw2_b": b2}


def init_ope_packed(key, cfg):
    """Returns (slab, layout): one f32 slab + static {name: (row0, rows, cols)}."""
    n_stack = cfg["num_CGC_layers"]
    ks = jax.random.split(key, 3 + n_stack)
    blocks = {}
    blocks.update(_pack_embeddings(
        ks[0], cfg["input_size_full"], cfg["input_size_task1"],
        cfg["input_size_task2"], cfg["emb_dim_full"], cfg["emb_dim_task1"],
        cfg["emb_dim_task2"]))
    lp = _pack_cgc_layer(ks[2], cfg["emb_dim_full"], cfg["emb_dim_task1"],
                         cfg["emb_dim_task2"], cfg["num_specific_experts"],
                         cfg["num_shared_experts"], cfg["experts_out"],
                         cfg["experts_hidden"], if_last=False)
    for k, v in lp.items():
        blocks[f"cgc0_{k}"] = v
    for i in range(n_stack):
        lp = _pack_cgc_layer(ks[3 + i], cfg["experts_out"], cfg["experts_out"],
                             cfg["experts_out"], cfg["num_specific_experts"],
                             cfg["num_shared_experts"], cfg["experts_out"],
                             cfg["experts_hidden"],
                             if_last=(i == n_stack - 1))
        for k, v in lp.items():
            blocks[f"cgc{1 + i}_{k}"] = v
    blocks.update(_pack_towers(ks[1], cfg["experts_out"], cfg["towers_hidden"]))

    width = max(v.shape[1] for v in blocks.values())
    layout, row = {}, 0
    for name, arr in blocks.items():
        layout[name] = (row, arr.shape[0], arr.shape[1])
        row += -(-arr.shape[0] // 8) * 8        # 8-row (sublane) alignment
    slab = np.zeros((row, width), np.float32)
    for name, arr in blocks.items():
        r0, nr, nc = layout[name]
        slab[r0:r0 + nr, 0:nc] = arr
    return jnp.asarray(slab), layout


# ----------------------------------------------------------------------------
if __name__ == "__main__":
    cfg = dict(
        input_size_full=12, input_size_task1=5, input_size_task2=5,
        emb_dim_full=16, emb_dim_task1=8, emb_dim_task2=8,
        num_CGC_layers=2, num_specific_experts=2, num_shared_experts=2,
        experts_out=16, experts_hidden=32, towers_hidden=8,
    )
    batch = 4

    root = jax.random.PRNGKey(0)
    k_params, k_x, k_x1, k_x2 = jax.random.split(root, 4)
    slab, layout = init_ope_packed(k_params, cfg)

    x = jax.random.normal(k_x, (batch, cfg["input_size_full"]), jnp.float32)
    x1 = jax.random.normal(k_x1, (batch, cfg["input_size_task1"]), jnp.float32)
    x2 = jax.random.normal(k_x2, (batch, cfg["input_size_task2"]), jnp.float32)

    fwd = jax.jit(lambda s, a, b, c: ope_forward(s, layout, a, b, c, cfg))
    y1, y2 = fwd(slab, x, x1, x2)
    jax.block_until_ready(y1)
    jax.block_until_ready(y2)

    assert y1.shape == (batch, 1) and y2.shape == (batch, 1)
    assert bool(jnp.all(jnp.isfinite(y1))) and bool(jnp.all(jnp.isfinite(y2)))

    # Pure-JAX reference on the same packed parameters (tolerance-check).
    r1, r2 = ope_reference(slab, layout, x, x1, x2, cfg)
    assert bool(jnp.allclose(y1, r1, atol=1e-3)), "task1 head mismatch vs reference"
    assert bool(jnp.allclose(y2, r2, atol=1e-3)), "task2 head mismatch vs reference"

    print("KERNEL_OK")
</pallas_src>

<mosaic_0001>
module attributes {stable_mosaic.version = 11 : i64} {
  func.func @_ope_kernel(%arg0: memref<8x22xf32, #tpu.memory_space<vmem>>, %arg1: memref<1000x192xf32, #tpu.memory_space<vmem>>, %arg2: memref<8x2xf32, #tpu.memory_space<vmem>>) attributes {dimension_semantics = [], scalar_prefetch = 0 : i64, scratch_operands = 0 : i64, tpu.core_type = #tpu.core_type<tc>} {
    %c0 = arith.constant 0 : index
    %c0_0 = arith.constant 0 : index
    %0 = vector.load %arg0[%c0, %c0_0] : memref<8x22xf32, #tpu.memory_space<vmem>>, vector<8x22xf32>
    %c0_1 = arith.constant 0 : index
    %c0_2 = arith.constant 0 : index
    %1 = vector.load %arg1[%c0_1, %c0_2] : memref<1000x192xf32, #tpu.memory_space<vmem>>, vector<22x32xf32>
    %cst = arith.constant dense<0.000000e+00> : vector<8x32xf32>
    %2 = tpu.matmul %0, %1, %cst {dimension_numbers = #tpu.dot_dimension_numbers<[1], [0], [0], [1], [0, 0, 1, 1], [], []>} : vector<8x22xf32>, vector<22x32xf32>, vector<8x32xf32> -> vector<8x32xf32>
    %c24 = arith.constant 24 : index
    %c0_3 = arith.constant 0 : index
    %3 = vector.load %arg1[%c24, %c0_3] : memref<1000x192xf32, #tpu.memory_space<vmem>>, vector<1x32xf32>
    %4 = vector.broadcast %3 : vector<1x32xf32> to vector<8x32xf32>
    %5 = arith.addf %2, %4 : vector<8x32xf32>
    %c32 = arith.constant 32 : index
    %c0_4 = arith.constant 0 : index
    %6 = vector.load %arg1[%c32, %c0_4] : memref<1000x192xf32, #tpu.memory_space<vmem>>, vector<32x192xf32>
    %cst_5 = arith.constant dense<0.000000e+00> : vector<8x192xf32>
    %7 = tpu.matmul %5, %6, %cst_5 {dimension_numbers = #tpu.dot_dimension_numbers<[1], [0], [0], [1], [0, 0, 1, 1], [], []>} : vector<8x32xf32>, vector<32x192xf32>, vector<8x192xf32> -> vector<8x192xf32>
    %c64 = arith.constant 64 : index
    %c0_6 = arith.constant 0 : index
    %8 = vector.load %arg1[%c64, %c0_6] : memref<1000x192xf32, #tpu.memory_space<vmem>>, vector<1x192xf32>
    %9 = vector.broadcast %8 : vector<1x192xf32> to vector<8x192xf32>
    %10 = arith.addf %7, %9 : vector<8x192xf32>
    %cst_7 = arith.constant 0.000000e+00 : f32
    %11 = vector.broadcast %cst_7 : f32 to vector<8x192xf32>
    %12 = arith.maximumf %10, %11 : vector<8x192xf32>
    %c72 = arith.constant 72 : index
    %c0_8 = arith.constant 0 : index
    %13 = vector.load %arg1[%c72, %c0_8] : memref<1000x192xf32, #tpu.memory_space<vmem>>, vector<192x96xf32>
    %cst_9 = arith.constant dense<0.000000e+00> : vector<8x96xf32>
    %14 = tpu.matmul %12, %13, %cst_9 {dimension_numbers = #tpu.dot_dimension_numbers<[1], [0], [0], [1], [0, 0, 1, 1], [], []>} : vector<8x192xf32>, vector<192x96xf32>, vector<8x96xf32> -> vector<8x96xf32>
    %c264 = arith.constant 264 : index
    %c0_10 = arith.constant 0 : index
    %15 = vector.load %arg1[%c264, %c0_10] : memref<1000x192xf32, #tpu.memory_space<vmem>>, vector<1x96xf32>
    %16 = vector.broadcast %15 : vector<1x96xf32> to vector<8x96xf32>
    %17 = arith.addf %14, %16 : vector<8x96xf32>
    %c272 = arith.constant 272 : index
    %c0_11 = arith.constant 0 : index
    %18 = vector.load %arg1[%c272, %c0_11] : memref<1000x192xf32, #tpu.memory_space<vmem>>, vector<32x14xf32>
    %cst_12 = arith.constant dense<0.000000e+00> : vector<8x14xf32>
    %19 = tpu.matmul %5, %18, %cst_12 {dimension_numbers = #tpu.dot_dimension_numbers<[1], [0], [0], [1], [0, 0, 1, 1], [], []>} : vector<8x32xf32>, vector<32x14xf32>, vector<8x14xf32> -> vector<8x14xf32>
    %c304 = arith.constant 304 : index
    %c0_13 = arith.constant 0 : index
    %20 = vector.load %arg1[%c304, %c0_13] : memref<1000x192xf32, #tpu.memory_space<vmem>>, vector<1x14xf32>
    %21 = vector.broadcast %20 : vector<1x14xf32> to vector<8x14xf32>
    %22 = arith.addf %19, %21 : vector<8x14xf32>
    %23 = vector.extract_strided_slice %22 {offsets = [0, 0], sizes = [8, 4], strides = [1, 1]} : vector<8x14xf32> to vector<8x4xf32>
    %cst_14 = arith.constant dense<0xFF800000> : vector<8xf32>
    %24 = vector.multi_reduction <maximumf>, %23, %cst_14 [1] : vector<8x4xf32> to vector<8xf32>
    %25 = vector.shape_cast %24 : vector<8xf32> to vector<8x1xf32>
    %26 = vector.broadcast %25 : vector<8x1xf32> to vector<8x4xf32>
    %27 = arith.subf %23, %26 : vector<8x4xf32>
    %28 = math.exp %27 : vector<8x4xf32>
    %cst_15 = arith.constant dense<0.000000e+00> : vector<8xf32>
    %29 = vector.multi_reduction <add>, %28, %cst_15 [1] : vector<8x4xf32> to vector<8xf32>
    %30 = vector.shape_cast %29 : vector<8xf32> to vector<8x1xf32>
    %31 = vector.broadcast %30 : vector<8x1xf32> to vector<8x4xf32>
    %32 = arith.divf %28, %31 : vector<8x4xf32>
    %33 = vector.extract_strided_slice %22 {offsets = [0, 4], sizes = [8, 4], strides = [1, 1]} : vector<8x14xf32> to vector<8x4xf32>
    %cst_16 = arith.constant dense<0xFF800000> : vector<8xf32>
    %34 = vector.multi_reduction <maximumf>, %33, %cst_16 [1] : vector<8x4xf32> to vector<8xf32>
    %35 = vector.shape_cast %34 : vector<8xf32> to vector<8x1xf32>
    %36 = vector.broadcast %35 : vector<8x1xf32> to vector<8x4xf32>
    %37 = arith.subf %33, %36 : vector<8x4xf32>
    %38 = math.exp %37 : vector<8x4xf32>
    %cst_17 = arith.constant dense<0.000000e+00> : vector<8xf32>
    %39 = vector.multi_reduction <add>, %38, %cst_17 [1] : vector<8x4xf32> to vector<8xf32>
    %40 = vector.shape_cast %39 : vector<8xf32> to vector<8x1xf32>
    %41 = vector.broadcast %40 : vector<8x1xf32> to vector<8x4xf32>
    %42 = arith.divf %38, %41 : vector<8x4xf32>
    %43 = vector.extract_strided_slice %17 {offsets = [0, 0], sizes = [8, 16], strides = [1, 1]} : vector<8x96xf32> to vector<8x16xf32>
    %44 = vector.extract_strided_slice %32 {offsets = [0, 0], sizes = [8, 1], strides = [1, 1]} : vector<8x4xf32> to vector<8x1xf32>
    %45 = vector.broadcast %44 : vector<8x1xf32> to vector<8x16xf32>
    %46 = arith.mulf %43, %45 : vector<8x16xf32>
    %47 = vector.extract_strided_slice %17 {offsets = [0, 16], sizes = [8, 16], strides = [1, 1]} : vector<8x96xf32> to vector<8x16xf32>
    %48 = vector.extract_strided_slice %32 {offsets = [0, 1], sizes = [8, 1], strides = [1, 1]} : vector<8x4xf32> to vector<8x1xf32>
    %49 = vector.broadcast %48 : vector<8x1xf32> to vector<8x16xf32>
    %50 = arith.mulf %47, %49 : vector<8x16xf32>
    %51 = arith.addf %46, %50 : vector<8x16xf32>
    %52 = vector.extract_strided_slice %17 {offsets = [0, 64], sizes = [8, 16], strides = [1, 1]} : vector<8x96xf32> to vector<8x16xf32>
    %53 = vector.extract_strided_slice %32 {offsets = [0, 2], sizes = [8, 1], strides = [1, 1]} : vector<8x4xf32> to vector<8x1xf32>
    %54 = vector.broadcast %53 : vector<8x1xf32> to vector<8x16xf32>
    %55 = arith.mulf %52, %54 : vector<8x16xf32>
    %56 = arith.addf %51, %55 : vector<8x16xf32>
    %57 = vector.extract_strided_slice %17 {offsets = [0, 80], sizes = [8, 16], strides = [1, 1]} : vector<8x96xf32> to vector<8x16xf32>
    %58 = vector.extract_strided_slice %32 {offsets = [0, 3], sizes = [8, 1], strides = [1, 1]} : vector<8x4xf32> to vector<8x1xf32>
    %59 = vector.broadcast %58 : vector<8x1xf32> to vector<8x16xf32>
    %60 = arith.mulf %57, %59 : vector<8x16xf32>
    %61 = arith.addf %56, %60 : vector<8x16xf32>
    %62 = vector.extract_strided_slice %17 {offsets = [0, 32], sizes = [8, 16], strides = [1, 1]} : vector<8x96xf32> to vector<8x16xf32>
    %63 = vector.extract_strided_slice %42 {offsets = [0, 0], sizes = [8, 1], strides = [1, 1]} : vector<8x4xf32> to vector<8x1xf32>
    %64 = vector.broadcast %63 : vector<8x1xf32> to vector<8x16xf32>
    %65 = arith.mulf %62, %64 : vector<8x16xf32>
    %66 = vector.extract_strided_slice %17 {offsets = [0, 48], sizes = [8, 16], strides = [1, 1]} : vector<8x96xf32> to vector<8x16xf32>
    %67 = vector.extract_strided_slice %42 {offsets = [0, 1], sizes = [8, 1], strides = [1, 1]} : vector<8x4xf32> to vector<8x1xf32>
    %68 = vector.broadcast %67 : vector<8x1xf32> to vector<8x16xf32>
    %69 = arith.mulf %66, %68 : vector<8x16xf32>
    %70 = arith.addf %65, %69 : vector<8x16xf32>
    %71 = vector.extract_strided_slice %17 {offsets = [0, 64], sizes = [8, 16], strides = [1, 1]} : vector<8x96xf32> to vector<8x16xf32>
    %72 = vector.extract_strided_slice %42 {offsets = [0, 2], sizes = [8, 1], strides = [1, 1]} : vector<8x4xf32> to vector<8x1xf32>
    %73 = vector.broadcast %72 : vector<8x1xf32> to vector<8x16xf32>
    %74 = arith.mulf %71, %73 : vector<8x16xf32>
    %75 = arith.addf %70, %74 : vector<8x16xf32>
    %76 = vector.extract_strided_slice %17 {offsets = [0, 80], sizes = [8, 16], strides = [1, 1]} : vector<8x96xf32> to vector<8x16xf32>
    %77 = vector.extract_strided_slice %42 {offsets = [0, 3], sizes = [8, 1], strides = [1, 1]} : vector<8x4xf32> to vector<8x1xf32>
    %78 = vector.broadcast %77 : vector<8x1xf32> to vector<8x16xf32>
    %79 = arith.mulf %76, %78 : vector<8x16xf32>
    %80 = arith.addf %75, %79 : vector<8x16xf32>
    %81 = vector.extract_strided_slice %22 {offsets = [0, 8], sizes = [8, 6], strides = [1, 1]} : vector<8x14xf32> to vector<8x6xf32>
    %cst_18 = arith.constant dense<0xFF800000> : vector<8xf32>
    %82 = vector.multi_reduction <maximumf>, %81, %cst_18 [1] : vector<8x6xf32> to vector<8xf32>
    %83 = vector.shape_cast %82 : vector<8xf32> to vector<8x1xf32>
    %84 = vector.broadcast %83 : vector<8x1xf32> to vector<8x6xf32>
    %85 = arith.subf %81, %84 : vector<8x6xf32>
    %86 = math.exp %85 : vector<8x6xf32>
    %cst_19 = arith.constant dense<0.000000e+00> : vector<8xf32>
    %87 = vector.multi_reduction <add>, %86, %cst_19 [1] : vector<8x6xf32> to vector<8xf32>
    %88 = vector.shape_cast %87 : vector<8xf32> to vector<8x1xf32>
    %89 = vector.broadcast %88 : vector<8x1xf32> to vector<8x6xf32>
    %90 = arith.divf %86, %89 : vector<8x6xf32>
    %91 = vector.extract_strided_slice %17 {offsets = [0, 0], sizes = [8, 16], strides = [1, 1]} : vector<8x96xf32> to vector<8x16xf32>
    %92 = vector.extract_strided_slice %90 {offsets = [0, 0], sizes = [8, 1], strides = [1, 1]} : vector<8x6xf32> to vector<8x1xf32>
    %93 = vector.broadcast %92 : vector<8x1xf32> to vector<8x16xf32>
    %94 = arith.mulf %91, %93 : vector<8x16xf32>
    %95 = vector.extract_strided_slice %17 {offsets = [0, 16], sizes = [8, 16], strides = [1, 1]} : vector<8x96xf32> to vector<8x16xf32>
    %96 = vector.extract_strided_slice %90 {offsets = [0, 1], sizes = [8, 1], strides = [1, 1]} : vector<8x6xf32> to vector<8x1xf32>
    %97 = vector.broadcast %96 : vector<8x1xf32> to vector<8x16xf32>
    %98 = arith.mulf %95, %97 : vector<8x16xf32>
    %99 = arith.addf %94, %98 : vector<8x16xf32>
    %100 = vector.extract_strided_slice %17 {offsets = [0, 32], sizes = [8, 16], strides = [1, 1]} : vector<8x96xf32> to vector<8x16xf32>
    %101 = vector.extract_strided_slice %90 {offsets = [0, 2], sizes = [8, 1], strides = [1, 1]} : vector<8x6xf32> to vector<8x1xf32>
    %102 = vector.broadcast %101 : vector<8x1xf32> to vector<8x16xf32>
    %103 = arith.mulf %100, %102 : vector<8x16xf32>
    %104 = arith.addf %99, %103 : vector<8x16xf32>
    %105 = vector.extract_strided_slice %17 {offsets = [0, 48], sizes = [8, 16], strides = [1, 1]} : vector<8x96xf32> to vector<8x16xf32>
    %106 = vector.extract_strided_slice %90 {offsets = [0, 3], sizes = [8, 1], strides = [1, 1]} : vector<8x6xf32> to vector<8x1xf32>
    %107 = vector.broadcast %106 : vector<8x1xf32> to vector<8x16xf32>
    %108 = arith.mulf %105, %107 : vector<8x16xf32>
    %109 = arith.addf %104, %108 : vector<8x16xf32>
    %110 = vector.extract_strided_slice %17 {offsets = [0, 64], sizes = [8, 16], strides = [1, 1]} : vector<8x96xf32> to vector<8x16xf32>
    %111 = vector.extract_strided_slice %90 {offsets = [0, 4], sizes = [8, 1], strides = [1, 1]} : vector<8x6xf32> to vector<8x1xf32>
    %112 = vector.broadcast %111 : vector<8x1xf32> to vector<8x16xf32>
    %113 = arith.mulf %110, %112 : vector<8x16xf32>
    %114 = arith.addf %109, %113 : vector<8x16xf32>
    %115 = vector.extract_strided_slice %17 {offsets = [0, 80], sizes = [8, 16], strides = [1, 1]} : vector<8x96xf32> to vector<8x16xf32>
    %116 = vector.extract_strided_slice %90 {offsets = [0, 5], sizes = [8, 1], strides = [1, 1]} : vector<8x6xf32> to vector<8x1xf32>
    %117 = vector.broadcast %116 : vector<8x1xf32> to vector<8x16xf32>
    %118 = arith.mulf %115, %117 : vector<8x16xf32>
    %119 = arith.addf %114, %118 : vector<8x16xf32>
    %120 = tpu.concatenate %119, %61, %80 in 1 : vector<8x16xf32>, vector<8x16xf32>, vector<8x16xf32> -> vector<8x48xf32>
    %c312 = arith.constant 312 : index
    %c0_20 = arith.constant 0 : index
    %121 = vector.load %arg1[%c312, %c0_20] : memref<1000x192xf32, #tpu.memory_space<vmem>>, vector<48x192xf32>
    %cst_21 = arith.constant dense<0.000000e+00> : vector<8x192xf32>
    %122 = tpu.matmul %120, %121, %cst_21 {dimension_numbers = #tpu.dot_dimension_numbers<[1], [0], [0], [1], [0, 0, 1, 1], [], []>} : vector<8x48xf32>, vector<48x192xf32>, vector<8x192xf32> -> vector<8x192xf32>
    %c360 = arith.constant 360 : index
    %c0_22 = arith.constant 0 : index
    %123 = vector.load %arg1[%c360, %c0_22] : memref<1000x192xf32, #tpu.memory_space<vmem>>, vector<1x192xf32>
    %124 = vector.broadcast %123 : vector<1x192xf32> to vector<8x192xf32>
    %125 = arith.addf %122, %124 : vector<8x192xf32>
    %cst_23 = arith.constant 0.000000e+00 : f32
    %126 = vector.broadcast %cst_23 : f32 to vector<8x192xf32>
    %127 = arith.maximumf %125, %126 : vector<8x192xf32>
    %c368 = arith.constant 368 : index
    %c0_24 = arith.constant 0 : index
    %128 = vector.load %arg1[%c368, %c0_24] : memref<1000x192xf32, #tpu.memory_space<vmem>>, vector<192x96xf32>
    %cst_25 = arith.constant dense<0.000000e+00> : vector<8x96xf32>
    %129 = tpu.matmul %127, %128, %cst_25 {dimension_numbers = #tpu.dot_dimension_numbers<[1], [0], [0], [1], [0, 0, 1, 1], [], []>} : vector<8x192xf32>, vector<192x96xf32>, vector<8x96xf32> -> vector<8x96xf32>
    %c560 = arith.constant 560 : index
    %c0_26 = arith.constant 0 : index
    %130 = vector.load %arg1[%c560, %c0_26] : memref<1000x192xf32, #tpu.memory_space<vmem>>, vector<1x96xf32>
    %131 = vector.broadcast %130 : vector<1x96xf32> to vector<8x96xf32>
    %132 = arith.addf %129, %131 : vector<8x96xf32>
    %c568 = arith.constant 568 : index
    %c0_27 = arith.constant 0 : index
    %133 = vector.load %arg1[%c568, %c0_27] : memref<1000x192xf32, #tpu.memory_space<vmem>>, vector<48x14xf32>
    %cst_28 = arith.constant dense<0.000000e+00> : vector<8x14xf32>
    %134 = tpu.matmul %120, %133, %cst_28 {dimension_numbers = #tpu.dot_dimension_numbers<[1], [0], [0], [1], [0, 0, 1, 1], [], []>} : vector<8x48xf32>, vector<48x14xf32>, vector<8x14xf32> -> vector<8x14xf32>
    %c616 = arith.constant 616 : index
    %c0_29 = arith.constant 0 : index
    %135 = vector.load %arg1[%c616, %c0_29] : memref<1000x192xf32, #tpu.memory_space<vmem>>, vector<1x14xf32>
    %136 = vector.broadcast %135 : vector<1x14xf32> to vector<8x14xf32>
    %137 = arith.addf %134, %136 : vector<8x14xf32>
    %138 = vector.extract_strided_slice %137 {offsets = [0, 0], sizes = [8, 4], strides = [1, 1]} : vector<8x14xf32> to vector<8x4xf32>
    %cst_30 = arith.constant dense<0xFF800000> : vector<8xf32>
    %139 = vector.multi_reduction <maximumf>, %138, %cst_30 [1] : vector<8x4xf32> to vector<8xf32>
    %140 = vector.shape_cast %139 : vector<8xf32> to vector<8x1xf32>
    %141 = vector.broadcast %140 : vector<8x1xf32> to vector<8x4xf32>
    %142 = arith.subf %138, %141 : vector<8x4xf32>
    %143 = math.exp %142 : vector<8x4xf32>
    %cst_31 = arith.constant dense<0.000000e+00> : vector<8xf32>
    %144 = vector.multi_reduction <add>, %143, %cst_31 [1] : vector<8x4xf32> to vector<8xf32>
    %145 = vector.shape_cast %144 : vector<8xf32> to vector<8x1xf32>
    %146 = vector.broadcast %145 : vector<8x1xf32> to vector<8x4xf32>
    %147 = arith.divf %143, %146 : vector<8x4xf32>
    %148 = vector.extract_strided_slice %137 {offsets = [0, 4], sizes = [8, 4], strides = [1, 1]} : vector<8x14xf32> to vector<8x4xf32>
    %cst_32 = arith.constant dense<0xFF800000> : vector<8xf32>
    %149 = vector.multi_reduction <maximumf>, %148, %cst_32 [1] : vector<8x4xf32> to vector<8xf32>
    %150 = vector.shape_cast %149 : vector<8xf32> to vector<8x1xf32>
    %151 = vector.broadcast %150 : vector<8x1xf32> to vector<8x4xf32>
    %152 = arith.subf %148, %151 : vector<8x4xf32>
    %153 = math.exp %152 : vector<8x4xf32>
    %cst_33 = arith.constant dense<0.000000e+00> : vector<8xf32>
    %154 = vector.multi_reduction <add>, %153, %cst_33 [1] : vector<8x4xf32> to vector<8xf32>
    %155 = vector.shape_cast %154 : vector<8xf32> to vector<8x1xf32>
    %156 = vector.broadcast %155 : vector<8x1xf32> to vector<8x4xf32>
    %157 = arith.divf %153, %156 : vector<8x4xf32>
    %158 = vector.extract_strided_slice %132 {offsets = [0, 0], sizes = [8, 16], strides = [1, 1]} : vector<8x96xf32> to vector<8x16xf32>
    %159 = vector.extract_strided_slice %147 {offsets = [0, 0], sizes = [8, 1], strides = [1, 1]} : vector<8x4xf32> to vector<8x1xf32>
    %160 = vector.broadcast %159 : vector<8x1xf32> to vector<8x16xf32>
    %161 = arith.mulf %158, %160 : vector<8x16xf32>
    %162 = vector.extract_strided_slice %132 {offsets = [0, 16], sizes = [8, 16], strides = [1, 1]} : vector<8x96xf32> to vector<8x16xf32>
    %163 = vector.extract_strided_slice %147 {offsets = [0, 1], sizes = [8, 1], strides = [1, 1]} : vector<8x4xf32> to vector<8x1xf32>
    %164 = vector.broadcast %163 : vector<8x1xf32> to vector<8x16xf32>
    %165 = arith.mulf %162, %164 : vector<8x16xf32>
    %166 = arith.addf %161, %165 : vector<8x16xf32>
    %167 = vector.extract_strided_slice %132 {offsets = [0, 64], sizes = [8, 16], strides = [1, 1]} : vector<8x96xf32> to vector<8x16xf32>
    %168 = vector.extract_strided_slice %147 {offsets = [0, 2], sizes = [8, 1], strides = [1, 1]} : vector<8x4xf32> to vector<8x1xf32>
    %169 = vector.broadcast %168 : vector<8x1xf32> to vector<8x16xf32>
    %170 = arith.mulf %167, %169 : vector<8x16xf32>
    %171 = arith.addf %166, %170 : vector<8x16xf32>
    %172 = vector.extract_strided_slice %132 {offsets = [0, 80], sizes = [8, 16], strides = [1, 1]} : vector<8x96xf32> to vector<8x16xf32>
    %173 = vector.extract_strided_slice %147 {offsets = [0, 3], sizes = [8, 1], strides = [1, 1]} : vector<8x4xf32> to vector<8x1xf32>
    %174 = vector.broadcast %173 : vector<8x1xf32> to vector<8x16xf32>
    %175 = arith.mulf %172, %174 : vector<8x16xf32>
    %176 = arith.addf %171, %175 : vector<8x16xf32>
    %177 = vector.extract_strided_slice %132 {offsets = [0, 32], sizes = [8, 16], strides = [1, 1]} : vector<8x96xf32> to vector<8x16xf32>
    %178 = vector.extract_strided_slice %157 {offsets = [0, 0], sizes = [8, 1], strides = [1, 1]} : vector<8x4xf32> to vector<8x1xf32>
    %179 = vector.broadcast %178 : vector<8x1xf32> to vector<8x16xf32>
    %180 = arith.mulf %177, %179 : vector<8x16xf32>
    %181 = vector.extract_strided_slice %132 {offsets = [0, 48], sizes = [8, 16], strides = [1, 1]} : vector<8x96xf32> to vector<8x16xf32>
    %182 = vector.extract_strided_slice %157 {offsets = [0, 1], sizes = [8, 1], strides = [1, 1]} : vector<8x4xf32> to vector<8x1xf32>
    %183 = vector.broadcast %182 : vector<8x1xf32> to vector<8x16xf32>
    %184 = arith.mulf %181, %183 : vector<8x16xf32>
    %185 = arith.addf %180, %184 : vector<8x16xf32>
    %186 = vector.extract_strided_slice %132 {offsets = [0, 64], sizes = [8, 16], strides = [1, 1]} : vector<8x96xf32> to vector<8x16xf32>
    %187 = vector.extract_strided_slice %157 {offsets = [0, 2], sizes = [8, 1], strides = [1, 1]} : vector<8x4xf32> to vector<8x1xf32>
    %188 = vector.broadcast %187 : vector<8x1xf32> to vector<8x16xf32>
    %189 = arith.mulf %186, %188 : vector<8x16xf32>
    %190 = arith.addf %185, %189 : vector<8x16xf32>
    %191 = vector.extract_strided_slice %132 {offsets = [0, 80], sizes = [8, 16], strides = [1, 1]} : vector<8x96xf32> to vector<8x16xf32>
    %192 = vector.extract_strided_slice %157 {offsets = [0, 3], sizes = [8, 1], strides = [1, 1]} : vector<8x4xf32> to vector<8x1xf32>
    %193 = vector.broadcast %192 : vector<8x1xf32> to vector<8x16xf32>
    %194 = arith.mulf %191, %193 : vector<8x16xf32>
    %195 = arith.addf %190, %194 : vector<8x16xf32>
    %196 = vector.extract_strided_slice %137 {offsets = [0, 8], sizes = [8, 6], strides = [1, 1]} : vector<8x14xf32> to vector<8x6xf32>
    %cst_34 = arith.constant dense<0xFF800000> : vector<8xf32>
    %197 = vector.multi_reduction <maximumf>, %196, %cst_34 [1] : vector<8x6xf32> to vector<8xf32>
    %198 = vector.shape_cast %197 : vector<8xf32> to vector<8x1xf32>
    %199 = vector.broadcast %198 : vector<8x1xf32> to vector<8x6xf32>
    %200 = arith.subf %196, %199 : vector<8x6xf32>
    %201 = math.exp %200 : vector<8x6xf32>
    %cst_35 = arith.constant dense<0.000000e+00> : vector<8xf32>
    %202 = vector.multi_reduction <add>, %201, %cst_35 [1] : vector<8x6xf32> to vector<8xf32>
    %203 = vector.shape_cast %202 : vector<8xf32> to vector<8x1xf32>
    %204 = vector.broadcast %203 : vector<8x1xf32> to vector<8x6xf32>
    %205 = arith.divf %201, %204 : vector<8x6xf32>
    %206 = vector.extract_strided_slice %132 {offsets = [0, 0], sizes = [8, 16], strides = [1, 1]} : vector<8x96xf32> to vector<8x16xf32>
    %207 = vector.extract_strided_slice %205 {offsets = [0, 0], sizes = [8, 1], strides = [1, 1]} : vector<8x6xf32> to vector<8x1xf32>
    %208 = vector.broadcast %207 : vector<8x1xf32> to vector<8x16xf32>
    %209 = arith.mulf %206, %208 : vector<8x16xf32>
    %210 = vector.extract_strided_slice %132 {offsets = [0, 16], sizes = [8, 16], strides = [1, 1]} : vector<8x96xf32> to vector<8x16xf32>
    %211 = vector.extract_strided_slice %205 {offsets = [0, 1], sizes = [8, 1], strides = [1, 1]} : vector<8x6xf32> to vector<8x1xf32>
    %212 = vector.broadcast %211 : vector<8x1xf32> to vector<8x16xf32>
    %213 = arith.mulf %210, %212 : vector<8x16xf32>
    %214 = arith.addf %209, %213 : vector<8x16xf32>
    %215 = vector.extract_strided_slice %132 {offsets = [0, 32], sizes = [8, 16], strides = [1, 1]} : vector<8x96xf32> to vector<8x16xf32>
    %216 = vector.extract_strided_slice %205 {offsets = [0, 2], sizes = [8, 1], strides = [1, 1]} : vector<8x6xf32> to vector<8x1xf32>
    %217 = vector.broadcast %216 : vector<8x1xf32> to vector<8x16xf32>
    %218 = arith.mulf %215, %217 : vector<8x16xf32>
    %219 = arith.addf %214, %218 : vector<8x16xf32>
    %220 = vector.extract_strided_slice %132 {offsets = [0, 48], sizes = [8, 16], strides = [1, 1]} : vector<8x96xf32> to vector<8x16xf32>
    %221 = vector.extract_strided_slice %205 {offsets = [0, 3], sizes = [8, 1], strides = [1, 1]} : vector<8x6xf32> to vector<8x1xf32>
    %222 = vector.broadcast %221 : vector<8x1xf32> to vector<8x16xf32>
    %223 = arith.mulf %220, %222 : vector<8x16xf32>
    %224 = arith.addf %219, %223 : vector<8x16xf32>
    %225 = vector.extract_strided_slice %132 {offsets = [0, 64], sizes = [8, 16], strides = [1, 1]} : vector<8x96xf32> to vector<8x16xf32>
    %226 = vector.extract_strided_slice %205 {offsets = [0, 4], sizes = [8, 1], strides = [1, 1]} : vector<8x6xf32> to vector<8x1xf32>
    %227 = vector.broadcast %226 : vector<8x1xf32> to vector<8x16xf32>
    %228 = arith.mulf %225, %227 : vector<8x16xf32>
    %229 = arith.addf %224, %228 : vector<8x16xf32>
    %230 = vector.extract_strided_slice %132 {offsets = [0, 80], sizes = [8, 16], strides = [1, 1]} : vector<8x96xf32> to vector<8x16xf32>
    %231 = vector.extract_strided_slice %205 {offsets = [0, 5], sizes = [8, 1], strides = [1, 1]} : vector<8x6xf32> to vector<8x1xf32>
    %232 = vector.broadcast %231 : vector<8x1xf32> to vector<8x16xf32>
    %233 = arith.mulf %230, %232 : vector<8x16xf32>
    %234 = arith.addf %229, %233 : vector<8x16xf32>
    %235 = tpu.concatenate %234, %176, %195 in 1 : vector<8x16xf32>, vector<8x16xf32>, vector<8x16xf32> -> vector<8x48xf32>
    %c624 = arith.constant 624 : index
    %c0_36 = arith.constant 0 : index
    %236 = vector.load %arg1[%c624, %c0_36] : memref<1000x192xf32, #tpu.memory_space<vmem>>, vector<48x192xf32>
    %cst_37 = arith.constant dense<0.000000e+00> : vector<8x192xf32>
    %237 = tpu.matmul %235, %236, %cst_37 {dimension_numbers = #tpu.dot_dimension_numbers<[1], [0], [0], [1], [0, 0, 1, 1], [], []>} : vector<8x48xf32>, vector<48x192xf32>, vector<8x192xf32> -> vector<8x192xf32>
    %c672 = arith.constant 672 : index
    %c0_38 = arith.constant 0 : index
    %238 = vector.load %arg1[%c672, %c0_38] : memref<1000x192xf32, #tpu.memory_space<vmem>>, vector<1x192xf32>
    %239 = vector.broadcast %238 : vector<1x192xf32> to vector<8x192xf32>
    %240 = arith.addf %237, %239 : vector<8x192xf32>
    %cst_39 = arith.constant 0.000000e+00 : f32
    %241 = vector.broadcast %cst_39 : f32 to vector<8x192xf32>
    %242 = arith.maximumf %240, %241 : vector<8x192xf32>
    %c680 = arith.constant 680 : index
    %c0_40 = arith.constant 0 : index
    %243 = vector.load %arg1[%c680, %c0_40] : memref<1000x192xf32, #tpu.memory_space<vmem>>, vector<192x96xf32>
    %cst_41 = arith.constant dense<0.000000e+00> : vector<8x96xf32>
    %244 = tpu.matmul %242, %243, %cst_41 {dimension_numbers = #tpu.dot_dimension_numbers<[1], [0], [0], [1], [0, 0, 1, 1], [], []>} : vector<8x192xf32>, vector<192x96xf32>, vector<8x96xf32> -> vector<8x96xf32>
    %c872 = arith.constant 872 : index
    %c0_42 = arith.constant 0 : index
    %245 = vector.load %arg1[%c872, %c0_42] : memref<1000x192xf32, #tpu.memory_space<vmem>>, vector<1x96xf32>
    %246 = vector.broadcast %245 : vector<1x96xf32> to vector<8x96xf32>
    %247 = arith.addf %244, %246 : vector<8x96xf32>
    %c880 = arith.constant 880 : index
    %c0_43 = arith.constant 0 : index
    %248 = vector.load %arg1[%c880, %c0_43] : memref<1000x192xf32, #tpu.memory_space<vmem>>, vector<48x8xf32>
    %cst_44 = arith.constant dense<0.000000e+00> : vector<8x8xf32>
    %249 = tpu.matmul %235, %248, %cst_44 {dimension_numbers = #tpu.dot_dimension_numbers<[1], [0], [0], [1], [0, 0, 1, 1], [], []>} : vector<8x48xf32>, vector<48x8xf32>, vector<8x8xf32> -> vector<8x8xf32>
    %c928 = arith.constant 928 : index
    %c0_45 = arith.constant 0 : index
    %250 = vector.load %arg1[%c928, %c0_45] : memref<1000x192xf32, #tpu.memory_space<vmem>>, vector<1x8xf32>
    %251 = vector.broadcast %250 : vector<1x8xf32> to vector<8x8xf32>
    %252 = arith.addf %249, %251 : vector<8x8xf32>
    %253 = vector.extract_strided_slice %252 {offsets = [0, 0], sizes = [8, 4], strides = [1, 1]} : vector<8x8xf32> to vector<8x4xf32>
    %cst_46 = arith.constant dense<0xFF800000> : vector<8xf32>
    %254 = vector.multi_reduction <maximumf>, %253, %cst_46 [1] : vector<8x4xf32> to vector<8xf32>
    %255 = vector.shape_cast %254 : vector<8xf32> to vector<8x1xf32>
    %256 = vector.broadcast %255 : vector<8x1xf32> to vector<8x4xf32>
    %257 = arith.subf %253, %256 : vector<8x4xf32>
    %258 = math.exp %257 : vector<8x4xf32>
    %cst_47 = arith.constant dense<0.000000e+00> : vector<8xf32>
    %259 = vector.multi_reduction <add>, %258, %cst_47 [1] : vector<8x4xf32> to vector<8xf32>
    %260 = vector.shape_cast %259 : vector<8xf32> to vector<8x1xf32>
    %261 = vector.broadcast %260 : vector<8x1xf32> to vector<8x4xf32>
    %262 = arith.divf %258, %261 : vector<8x4xf32>
    %263 = vector.extract_strided_slice %252 {offsets = [0, 4], sizes = [8, 4], strides = [1, 1]} : vector<8x8xf32> to vector<8x4xf32>
    %cst_48 = arith.constant dense<0xFF800000> : vector<8xf32>
    %264 = vector.multi_reduction <maximumf>, %263, %cst_48 [1] : vector<8x4xf32> to vector<8xf32>
    %265 = vector.shape_cast %264 : vector<8xf32> to vector<8x1xf32>
    %266 = vector.broadcast %265 : vector<8x1xf32> to vector<8x4xf32>
    %267 = arith.subf %263, %266 : vector<8x4xf32>
    %268 = math.exp %267 : vector<8x4xf32>
    %cst_49 = arith.constant dense<0.000000e+00> : vector<8xf32>
    %269 = vector.multi_reduction <add>, %268, %cst_49 [1] : vector<8x4xf32> to vector<8xf32>
    %270 = vector.shape_cast %269 : vector<8xf32> to vector<8x1xf32>
    %271 = vector.broadcast %270 : vector<8x1xf32> to vector<8x4xf32>
    %272 = arith.divf %268, %271 : vector<8x4xf32>
    %273 = vector.extract_strided_slice %247 {offsets = [0, 0], sizes = [8, 16], strides = [1, 1]} : vector<8x96xf32> to vector<8x16xf32>
    %274 = vector.extract_strided_slice %262 {offsets = [0, 0], sizes = [8, 1], strides = [1, 1]} : vector<8x4xf32> to vector<8x1xf32>
    %275 = vector.broadcast %274 : vector<8x1xf32> to vector<8x16xf32>
    %276 = arith.mulf %273, %275 : vector<8x16xf32>
    %277 = vector.extract_strided_slice %247 {offsets = [0, 16], sizes = [8, 16], strides = [1, 1]} : vector<8x96xf32> to vector<8x16xf32>
    %278 = vector.extract_strided_slice %262 {offsets = [0, 1], sizes = [8, 1], strides = [1, 1]} : vector<8x4xf32> to vector<8x1xf32>
    %279 = vector.broadcast %278 : vector<8x1xf32> to vector<8x16xf32>
    %280 = arith.mulf %277, %279 : vector<8x16xf32>
    %281 = arith.addf %276, %280 : vector<8x16xf32>
    %282 = vector.extract_strided_slice %247 {offsets = [0, 64], sizes = [8, 16], strides = [1, 1]} : vector<8x96xf32> to vector<8x16xf32>
    %283 = vector.extract_strided_slice %262 {offsets = [0, 2], sizes = [8, 1], strides = [1, 1]} : vector<8x4xf32> to vector<8x1xf32>
    %284 = vector.broadcast %283 : vector<8x1xf32> to vector<8x16xf32>
    %285 = arith.mulf %282, %284 : vector<8x16xf32>
    %286 = arith.addf %281, %285 : vector<8x16xf32>
    %287 = vector.extract_strided_slice %247 {offsets = [0, 80], sizes = [8, 16], strides = [1, 1]} : vector<8x96xf32> to vector<8x16xf32>
    %288 = vector.extract_strided_slice %262 {offsets = [0, 3], sizes = [8, 1], strides = [1, 1]} : vector<8x4xf32> to vector<8x1xf32>
    %289 = vector.broadcast %288 : vector<8x1xf32> to vector<8x16xf32>
    %290 = arith.mulf %287, %289 : vector<8x16xf32>
    %291 = arith.addf %286, %290 : vector<8x16xf32>
    %292 = vector.extract_strided_slice %247 {offsets = [0, 32], sizes = [8, 16], strides = [1, 1]} : vector<8x96xf32> to vector<8x16xf32>
    %293 = vector.extract_strided_slice %272 {offsets = [0, 0], sizes = [8, 1], strides = [1, 1]} : vector<8x4xf32> to vector<8x1xf32>
    %294 = vector.broadcast %293 : vector<8x1xf32> to vector<8x16xf32>
    %295 = arith.mulf %292, %294 : vector<8x16xf32>
    %296 = vector.extract_strided_slice %247 {offsets = [0, 48], sizes = [8, 16], strides = [1, 1]} : vector<8x96xf32> to vector<8x16xf32>
    %297 = vector.extract_strided_slice %272 {offsets = [0, 1], sizes = [8, 1], strides = [1, 1]} : vector<8x4xf32> to vector<8x1xf32>
    %298 = vector.broadcast %297 : vector<8x1xf32> to vector<8x16xf32>
    %299 = arith.mulf %296, %298 : vector<8x16xf32>
    %300 = arith.addf %295, %299 : vector<8x16xf32>
    %301 = vector.extract_strided_slice %247 {offsets = [0, 64], sizes = [8, 16], strides = [1, 1]} : vector<8x96xf32> to vector<8x16xf32>
    %302 = vector.extract_strided_slice %272 {offsets = [0, 2], sizes = [8, 1], strides = [1, 1]} : vector<8x4xf32> to vector<8x1xf32>
    %303 = vector.broadcast %302 : vector<8x1xf32> to vector<8x16xf32>
    %304 = arith.mulf %301, %303 : vector<8x16xf32>
    %305 = arith.addf %300, %304 : vector<8x16xf32>
    %306 = vector.extract_strided_slice %247 {offsets = [0, 80], sizes = [8, 16], strides = [1, 1]} : vector<8x96xf32> to vector<8x16xf32>
    %307 = vector.extract_strided_slice %272 {offsets = [0, 3], sizes = [8, 1], strides = [1, 1]} : vector<8x4xf32> to vector<8x1xf32>
    %308 = vector.broadcast %307 : vector<8x1xf32> to vector<8x16xf32>
    %309 = arith.mulf %306, %308 : vector<8x16xf32>
    %310 = arith.addf %305, %309 : vector<8x16xf32>
    %311 = tpu.concatenate %291, %310 in 1 : vector<8x16xf32>, vector<8x16xf32> -> vector<8x32xf32>
    %c936 = arith.constant 936 : index
    %c0_50 = arith.constant 0 : index
    %312 = vector.load %arg1[%c936, %c0_50] : memref<1000x192xf32, #tpu.memory_space<vmem>>, vector<32x16xf32>
    %cst_51 = arith.constant dense<0.000000e+00> : vector<8x16xf32>
    %313 = tpu.matmul %311, %312, %cst_51 {dimension_numbers = #tpu.dot_dimension_numbers<[1], [0], [0], [1], [0, 0, 1, 1], [], []>} : vector<8x32xf32>, vector<32x16xf32>, vector<8x16xf32> -> vector<8x16xf32>
    %c968 = arith.constant 968 : index
    %c0_52 = arith.constant 0 : index
    %314 = vector.load %arg1[%c968, %c0_52] : memref<1000x192xf32, #tpu.memory_space<vmem>>, vector<1x16xf32>
    %315 = vector.broadcast %314 : vector<1x16xf32> to vector<8x16xf32>
    %316 = arith.addf %313, %315 : vector<8x16xf32>
    %cst_53 = arith.constant 0.000000e+00 : f32
    %317 = vector.broadcast %cst_53 : f32 to vector<8x16xf32>
    %318 = arith.maximumf %316, %317 : vector<8x16xf32>
    %c976 = arith.constant 976 : index
    %c0_54 = arith.constant 0 : index
    %319 = vector.load %arg1[%c976, %c0_54] : memref<1000x192xf32, #tpu.memory_space<vmem>>, vector<16x2xf32>
    %cst_55 = arith.constant dense<0.000000e+00> : vector<8x2xf32>
    %320 = tpu.matmul %318, %319, %cst_55 {dimension_numbers = #tpu.dot_dimension_numbers<[1], [0], [0], [1], [0, 0, 1, 1], [], []>} : vector<8x16xf32>, vector<16x2xf32>, vector<8x2xf32> -> vector<8x2xf32>
    %c992 = arith.constant 992 : index
    %c0_56 = arith.constant 0 : index
    %321 = vector.load %arg1[%c992, %c0_56] : memref<1000x192xf32, #tpu.memory_space<vmem>>, vector<1x2xf32>
    %322 = vector.broadcast %321 : vector<1x2xf32> to vector<8x2xf32>
    %323 = arith.addf %320, %322 : vector<8x2xf32>
    %324 = arith.negf %323 : vector<8x2xf32>
    %325 = math.exp %324 : vector<8x2xf32>
    %cst_57 = arith.constant 1.000000e+00 : f32
    %326 = vector.broadcast %cst_57 : f32 to vector<8x2xf32>
    %327 = arith.addf %326, %325 : vector<8x2xf32>
    %328 = arith.divf %326, %327 : vector<8x2xf32>
    %c0_58 = arith.constant 0 : index
    %c0_59 = arith.constant 0 : index
    %329 = vector.load %arg2[%c0_58, %c0_59] : memref<8x2xf32, #tpu.memory_space<vmem>>, vector<8x2xf32>
    tpu.vector_store %arg2[%c0_58, %c0_59], %328 {strides = array<i32>} : memref<8x2xf32, #tpu.memory_space<vmem>>, vector<8x2xf32>,
    return
  }
}

</mosaic_0001>

<bundles_post_ra>
// kernel: _lambda_.1
= control target key start
LH: loop header
LB: loop body
LE: loop exit
PB: predicated region body
PF: predicated region fallthrough
CT: control target
= control target key end

     0   :  { %v1934_v0 = vmov 0.0|0.0   ;;  %vm1935_vm0 = vmmov 0   ;;  %v1936_v3 = vmov 0.0   ;;  %vm20_vm1 = vcmask 1045504   ;;  %s1939_s9 = smov 124   ;;  %s1949_s12 = smov 48   ;;  %s2614_s1 = inlined_call_operand.vmem [shape: f32[1000,192], index: 1, kind: input, shape index: {}]   ;;  %s2615_s0 = inlined_call_operand.vmem [shape: f32[8,22], index: 0, kind: input, shape index: {}]   ;;  %s2616_s2 = inlined_call_operand.vmem [shape: f32[8,2], index: 2, kind: output, shape index: {}]  }
   0x1   :  { %1660 = vmatprep.subr.bf16.mxu0 %v1934_v0  ;;  %v12_v1 = vld [vmem:[%s2614_s1] sm:$0xff]  ;;  %v13_v2 = vld [vmem:[%s2614_s1 + $0x10] sm:$0xff]  ;;  %1598 = vmatprep.mubr.msk.f32.mxu0 %vm1935_vm0, %v1936_v3  ;;  %v95_v5 = vld [vmem:[%s2614_s1 + $0x48] sm:$0xff]  ;;  %vm16_vm2 = vcmask 179200   ;;  %vm115_vm3 = vcmask 261120   ;;  %vm217_vm4 = vcmask 523264  }
   0x2   :  { %v1661_v4 = vpack.c.bf16 %v13_v2, %v12_v1  ;;  %v97_v6 = vld [vmem:[%s2614_s1 + $0x58] sm:$0xff]  ;;  %183 = vmatprep.mubr.f32.mxu1 %v1936_v3  ;;  %v94_v8 = vld [vmem:[%s2614_s1 + $0x40] sm:$0xff]  ;;  %v96_v9 = vld [vmem:[%s2614_s1 + $0x50] sm:$0xff]  ;;  %v105_v2 = vlaneseq  ;;  %vm466_vm5 = vcmask 113728   ;;  %vm378_vm6 = vcmask 64544   ;;  %s1953_s13 = smov 112  }
   0x3   :  { %v1663_v7 = vpack.c.bf16 %v97_v6, %v95_v5  ;;  %v99_v10 = vld [vmem:[%s2614_s1 + $0x68] sm:$0xff]  ;;  %v1665_v11 = vpack.c.bf16 %v96_v9, %v94_v8  ;;  %v101_v12 = vld [vmem:[%s2614_s1 + $0x78] sm:$0xff]  ;;  %v98_v13 = vld [vmem:[%s2614_s1 + $0x60] sm:$0xff]  ;;  %vm366_vm7 = vcmask 31744   ;;  %vm477_vm8 = vcmask 48128   ;;  %s1955_s14 = smov 64  }
   0x4   :  { %1662 = vmatpush3.bf16.msra.mxu0 %v1661_v4  ;;  %v100_v14 = vld [vmem:[%s2614_s1 + $0x70] sm:$0xff]  ;;  %v14_v15 = vld [vmem:[%s2614_s1 + $0x20] sm:$0x3f]  ;;  %v1667_v16 = vpack.c.bf16 %v101_v12, %v99_v10  ;;  %v106_v4 = vshrl.u32 %v105_v2, 7  ;;  %v1948_v2 = vmov 12   ;;  %s1956_s15 = smov 96  }
   0x5   :  { %1596 = vmatprep.subr.mxu0 %v1936_v3  ;;  %1664 = vmatprep.subr.bf16.mxu1 %v1663_v7  ;;  %v11_v17 = vld [vmem:[%s2615_s0] sm:$0xff]  ;;  %v1669_v18 = vpack.c.bf16 %v100_v14, %v98_v13  ;;  %v192_v19 = vld [vmem:[%s2614_s1 + $0x90] sm:$0xff]  ;;  %s1937_s0 = smov 120   ;;  %s1957_s16 = smov 80   ;;  %vm543_vm9 = vcmask 130048   ;;  %vm571_vm10 = vcmask 392192  }
   0x6   :  { %1666 = vmatpush1.bf16.msra.mxu1 %v1665_v11  ;;  %v193_v20 = vld [vmem:[%s2614_s1 + $0xa0] sm:$0xff]  ;;  %v194_v21 = vld [vmem:[%s2614_s1 + $0xb0] sm:$0xff]  ;;  %v2121_v5 = vsub.s32 0, %v106_v4  ;;  %v2126_v7 = vsub.s32 1, %v106_v4  ;;  %v1950_v4 = vmov 4   ;;  %s1958_s19 = smov 16  }
   0x7   :  { %1668 = vmatprep.subr.bf16.mxu1 %v1667_v16  ;;  %v1672_v22 = vpack.c.bf16 %v193_v20, %v192_v19  ;;  %v195_v23 = vld [vmem:[%s2614_s1 + $0xc0] sm:$0xff]  ;;  %v196_v25 = vld [vmem:[%s2614_s1 + $0xd0] sm:$0xff]  ;;  %vm1538_vm11 = vcmask 15360  }
   0x8   :  { %1597 = vmatpush3.msk.msra.mxu0 %vm20_vm1, %v14_v15  ;;  %v1675_v24 = vpack.c.bf16 %v195_v23, %v194_v21  ;;  %v197_v26 = vld [vmem:[%s2614_s1 + $0xe0] sm:$0xff]  ;;  %v198_v28 = vld [vmem:[%s2614_s1 + $0xf0] sm:$0xff] }
   0x9   :  { %1599 = vmatmul.mubr.msk.f32.vlgmr.msra.gmra.mrb[0].mxu0 %vm16_vm2, %v11_v17  ;;  %1671 = vmatprep.subr.bf16.mxu0 %v1934_v0  ;;  %v1678_v27 = vpack.c.bf16 %v197_v26, %v196_v25  ;;  %v199_v29 = vld [vmem:[%s2614_s1 + $0x100] sm:$0xff]  ;;  %v200_v31 = vld [vmem:[%s2614_s1 + $0x110] sm:$0xff] }
   0xa   :  { %1670 = vmatpush1.bf16.msra.mxu1 %v1669_v18  ;;  %1673 = vmatpush1.bf16.msra.mxu0 %v1672_v22  ;;  %v1681_v30 = vpack.c.bf16 %v199_v29, %v198_v28  ;;  %v201_v32 = vld [vmem:[%s2614_s1 + $0x120] sm:$0xff]  ;;  %v202_v34 = vld [vmem:[%s2614_s1 + $0x130] sm:$0xff] }
   0xb   :  { %1707 = vmatprep.subr.bf16.mxu1 %v1934_v0  ;;  %1674 = vmatprep.subr.bf16.mxu0 %v1934_v0  ;;  %v1684_v33 = vpack.c.bf16 %v201_v32, %v200_v31  ;;  %v203_v35 = vld [vmem:[%s2614_s1 + $0x140] sm:$0xff]  ;;  %v204_v37 = vld [vmem:[%s2614_s1 + $0x150] sm:$0xff] }
   0xc   :  { %v1687_v36 = vpack.c.bf16 %v203_v35, %v202_v34  ;;  %v205_v38 = vld [vmem:[%s2614_s1 + $0x160] sm:$0xff]  ;;  %v206_v40 = vld [vmem:[%s2614_s1 + $0x170] sm:$0xff]  ;;  %v1938_v35 = vmov 1  }
   0xd   :  { %v1690_v39 = vpack.c.bf16 %v205_v38, %v204_v37  ;;  %v207_v41 = vld [vmem:[%s2614_s1 + $0x180] sm:$0xff]  ;;  %v208_v43 = vld [vmem:[%s2614_s1 + $0x190] sm:$0xff]  ;;  %1861 = vset.pattern.permute.xlu1 %v1938_v35  ;;  %v1940_v37 = vmov 2  }
   0xe   :  { %1676 = vmatpush1.bf16.msra.mxu0 %v1675_v24  ;;  %v1693_v42 = vpack.c.bf16 %v207_v41, %v206_v40  ;;  %v209_v44 = vld [vmem:[%s2614_s1 + $0x1a0] sm:$0xff]  ;;  %v210_v46 = vld [vmem:[%s2614_s1 + $0x1b0] sm:$0xff]  ;;  %1862 = vset.pattern.permute.xlu0 %v1940_v37 }
   0xf   :  { %1677 = vmatprep.subr.bf16.mxu0 %v1934_v0  ;;  %v1696_v45 = vpack.c.bf16 %v209_v44, %v208_v43  ;;  %v211_v47 = vld [vmem:[%s2614_s1 + $0x1c0] sm:$0xff]  ;;  %v292_v50 = vld [vmem:[%s2614_s1 + $0x230] sm:$0xff] }
  0x10   :  { %v1699_v48 = vpack.c.bf16 %v211_v47, %v210_v46  ;;  %v291_v49 = vld [vmem:[%s2614_s1 + $0x220] sm:$0xff]  ;;  %v15_v51 = vld [vmem:[%s2614_s1 + $0x30] ss:$0 sm:$0xff]  ;;  %v1941_v47 = vmov 3  }
  0x11   :  { %v1708_v53 = vpack.c.bf16 %v292_v50, %v291_v49  ;;  %v293_v56 = vld [vmem:[%s2614_s1 + $0x240] sm:$0xff]  ;;  %v294_v57 = vld [vmem:[%s2614_s1 + $0x250] sm:$0xff]  ;;  %v1943_v49 = vmov 9   ;;  %v1944_v50 = vmov 7  }
  0x12   :  { %1679 = vmatpush1.bf16.msra.mxu0 %v1678_v27  ;;  %v1711_v58 = vpack.c.bf16 %v294_v57, %v293_v56  ;;  %v212_v59 = vld [vmem:[%s2614_s1 + $0x1d0] sm:$0xff]  ;;  %v213_v60 = vld [vmem:[%s2614_s1 + $0x1e0] sm:$0xff]  ;;  %v1947_v56 = vmov 5  }
  0x13   :  { %1680 = vmatprep.subr.bf16.mxu0 %v1934_v0  ;;  %v1702_v61 = vpack.c.bf16 %v213_v60, %v212_v59  ;;  %v214_v62 = vld [vmem:[%s2614_s1 + $0x1f0] sm:$0xff]  ;;  %v215_v63 = vld [vmem:[%s2614_s1 + $0x200] sm:$0xff] }
  0x14   :  { %v1705_v1 = vpack.c.bf16 %v215_v63, %v214_v62  ;;  %v1546_v6 = vld [vmem:[%s2614_s1 + $0x80] ss:$8 sm:$0x3]  ;;  %v216_v60 = vld [vmem:[%s2614_s1 + $0x210] ss:$0 sm:$0xff] }
  0x15   :  { %v108_v8 = vrot.slane %v1546_v6, %v2121_v5  ;;  %v112_v9 = vrot.slane %v1546_v6, %v2126_v7  ;;  %v295_v16 = vld [vmem:[%s2614_s1 + $0x260] ss:$0 sm:$0xff]  ;;  %v1951_v6 = vmov 6  }
  0x16   :  { %1682 = vmatpush1.bf16.msra.mxu0 %v1681_v30 }
  0x17   :  { %1683 = vmatprep.subr.bf16.mxu0 %v1934_v0 }
  0x1a   :  { %1685 = vmatpush1.bf16.msra.mxu0 %v1684_v33 }
  0x1b   :  { %1686 = vmatprep.subr.bf16.mxu0 %v1934_v0 }
  0x1e   :  { %1688 = vmatpush1.bf16.msra.mxu0 %v1687_v36 }
  0x1f   :  { %1689 = vmatprep.subr.bf16.mxu0 %v1934_v0 }
  0x22   :  { %1691 = vmatpush1.bf16.msra.mxu0 %v1690_v39 }
  0x23   :  { %1692 = vmatprep.subr.bf16.mxu0 %v1934_v0 }
  0x26   :  { %1694 = vmatpush1.bf16.msra.mxu0 %v1693_v42 }
  0x27   :  { %1695 = vmatprep.subr.bf16.mxu0 %v1934_v0 }
  0x2a   :  { %1697 = vmatpush1.bf16.msra.mxu0 %v1696_v45 }
  0x2b   :  { %1698 = vmatprep.subr.bf16.mxu0 %v1934_v0 }
  0x2e   :  { %1700 = vmatpush1.bf16.msra.mxu0 %v1699_v48  ;;  %v1942_v48 = vmov 0  }
  0x2f   :  { %1701 = vmatprep.subr.bf16.mxu0 %v1934_v0 }
  0x32   :  { %1703 = vmatpush1.bf16.msra.mxu0 %v1702_v61 }
  0x33   :  { %1704 = vmatprep.subr.bf16.mxu0 %v1934_v0 }
  0x36   :  { %1706 = vmatpush1.bf16.msra.mxu0 %v1705_v1 }
  0xdc   :  { %v90_v52 = vpop.f32.mrb[0].mxu0 }
  0xdd   :  { %v91_v54 = vadd.f32 %v90_v52, %v15_v51  ;;  %v1600_v55 = vpop.f32.mrb[1].mxu0 }
  0xde   :  { %v1946_v55 = vmov 11  }
  0xdf   :  { %1547 = vmatmul.mubr.msk.f32.vlgmr.msra.gmra.mrb[0].mxu1 %vm115_vm3, %v91_v54 }
  0xe0   :  { %1709 = vmatpush3.bf16.msra.mxu1 %v1708_v53  ;;  %1609 = vmatprep.mubr.msk.f32.mxu1 %vm1935_vm0, %v1936_v3 }
  0xe1   :  { %1710 = vmatprep.subr.bf16.mxu1 %v1934_v0 }
  0xe4   :  { %1712 = vmatpush3.bf16.msra.mxu1 %v1711_v58 }
  0xe5   :  { %1725 = vmatprep.subr.bf16.mxu1 %v1934_v0 }
  0xe7   :  { %1610 = vmatmul.mubr.msk.f32.vlgmr.msra.gmra.mrb[2].mxu1 %vm115_vm3, %v91_v54  ;;  %v1945_v54 = vmov 10  }
 0x1b2   :  { %v185_v10 = vpop.f32.mrb[0].mxu1 }
 0x1b3   :  { %v186_v11 = vadd.f32 %v185_v10, %v108_v8  ;;  %v187_v12 = vpop.f32.mrb[1].mxu1  ;;  %v1952_v8 = vmov 13  }
 0x1b4   :  { %v188_v13 = vadd.f32 %v187_v12, %v112_v9 }
 0x1b5   :  { %v190_v15 = vmax.f32 %v186_v11, 0.0  ;;  %v1954_v11 = vmov 8  }
 0x1b6   :  { %v191_v14 = vmax.f32 %v188_v13, 0.0 }
 0x1b8   :  { %1548 = vmatprep.mubr.msk.f32.mxu0 %vm217_vm4, %v191_v14 }
 0x1b9   :  { %286 = vmatmul.mubr.f32.vlgmr.msra.gmra.mrb[2].mxu0 %v190_v15 }
 0x1ba   :  { %v362_v17 = vpop.f32.mrb[2].mxu1  ;;  %639 = vmatprep.mubr.f32.mxu0 %v1936_v3 }
 0x1bb   :  { %v363_v18 = vadd.f32 %v362_v17, %v295_v16  ;;  %v1611_v19 = vpop.f32.mrb[3].mxu1 }
 0x1bd   :  { %v467_v20 = vsel %vm466_vm5, %v363_v18, -inf  ;;  %v379_v21 = vsel %vm378_vm6, %v363_v18, -inf  ;;  %v367_v22 = vsel %vm366_vm7, %v363_v18, -inf }
 0x1be   :  { %468 = vmax.xlane.f32.xlu0 %v467_v20  ;;  %380 = vmax.xlane.f32.xlu1 %v379_v21 }
 0x1c2   :  { %368 = vmax.xlane.f32.xlu0 %v367_v22  ;;  %v547_v22 = vld [vmem:[%s2614_s1 + $0x278] sm:$0xff] }
 0x24b   :  { %v469_v23 = vpop.xlane.xlu0 %468  ;;  %v381_v32 = vpop.xlane.xlu1 %380 }
 0x24c   :  { %v470_v24 = vsub.f32 %v363_v18, %v469_v23  ;;  %v382_v33 = vsub.f32 %v363_v18, %v381_v32  ;;  %v549_v23 = vld [vmem:[%s2614_s1 + $0x288] sm:$0xff] }
 0x24e   :  { %v471_v25 = vmul.f32 1.442695, %v470_v24  ;;  %v383_v34 = vmul.f32 1.442695, %v382_v33  ;;  %v1713_v24 = vpack.c.bf16 %v549_v23, %v547_v22  ;;  %v656_v22 = vld [vmem:[%s2614_s1 + $0x360] sm:$0xff]  ;;  %v657_v23 = vld [vmem:[%s2614_s1 + $0x370] sm:$0xff] }
 0x24f   :  { %v369_v26 = vpop.xlane.xlu0 %368 }
 0x250   :  { %1898 = vpow2.f32 %v471_v25  ;;  %v370_v27 = vsub.f32 %v363_v18, %v369_v26  ;;  %v546_v25 = vld [vmem:[%s2614_s1 + $0x270] sm:$0xff]  ;;  %v548_v26 = vld [vmem:[%s2614_s1 + $0x280] sm:$0xff]  ;;  %1714 = vmatprep.subr.bf16.mxu0 %v1713_v24  ;;  %v1738_v24 = vpack.c.bf16 %v657_v23, %v656_v22 }
 0x251   :  { %v750_v23 = vld [vmem:[%s2614_s1 + $0x4b0] sm:$0xff] }
 0x252   :  { %v371_v28 = vmul.f32 1.442695, %v370_v27  ;;  %v1715_v27 = vpack.c.bf16 %v548_v26, %v546_v25  ;;  %v658_v25 = vld [vmem:[%s2614_s1 + $0x380] sm:$0xff]  ;;  %v659_v26 = vld [vmem:[%s2614_s1 + $0x390] sm:$0xff] }
 0x254   :  { %1900 = vpow2.f32 %v371_v28  ;;  %1716 = vmatpush1.bf16.msra.mxu0 %v1715_v27  ;;  %v1741_v27 = vpack.c.bf16 %v659_v26, %v658_v25  ;;  %v668_v26 = vld [vmem:[%s2614_s1 + $0x420] sm:$0xff] }
 0x255   :  { %1902 = vpow2.f32 %v383_v34  ;;  %v552_v34 = vld [vmem:[%s2614_s1 + $0x2a0] sm:$0xff] }
 0x25a   :  { %v1899_v29 = vpop.eup %1898 }
 0x25b   :  { %474 = vrot.lane.b32.xlu1 %v1899_v29, %s1937_s0 }
 0x25e   :  { %v1901_v30 = vpop.eup %1900 }
 0x25f   :  { %v373_v31 = vsel %vm366_vm7, %v1901_v30, 0.0  ;;  %v1903_v36 = vpop.eup %1902 }
 0x260   :  { %374 = vadd.xlane.f32.xlu0 %v373_v31  ;;  %v550_v31 = vld [vmem:[%s2614_s1 + $0x290] sm:$0xff] }
 0x276   :  { %386 = vrot.lane.b32.xlu0 %v1903_v36, %s1939_s9 }
 0x28c   :  { %v287_v38 = vpop.f32.mrb[2].mxu0 }
 0x28d   :  { %v289_v39 = vpop.f32.mrb[3].mxu0  ;;  %v2155_v63 = vadd.f32 %v287_v38, %v216_v60  ;;  %v557_v38 = vld [vmem:[%s2614_s1 + $0x2c8] sm:$0xff] }
 0x28e   :  { %v1719_v39 = vpack.c.bf16 %v552_v34, %v550_v31  ;;  %v662_v31 = vld [vmem:[%s2614_s1 + $0x3c0] sm:$0xff] }
 0x28f   :  { %v664_v34 = vld [vmem:[%s2614_s1 + $0x3e0] sm:$0xff] }
 0x2cd   :  { %v475_v40 = vpop.permute.xlu1 %474 }
 0x2ce   :  { %v478_v41 = vsel %vm477_vm8, %v475_v40, 0.0 }
 0x2cf   :  { %479 = vadd.xlane.f32.xlu1 %v478_v41  ;;  %v554_v41 = vld [vmem:[%s2614_s1 + $0x2b0] sm:$0xff] }
 0x2ed   :  { %v375_v42 = vpop.xlane.xlu0 %374 }
 0x2ee   :  { %1904 = vrcp.f32 %v375_v42  ;;  %v556_v42 = vld [vmem:[%s2614_s1 + $0x2c0] sm:$0xff] }
 0x2f1   :  { %v387_v43 = vpop.permute.xlu0 %386 }
 0x2f2   :  { %v389_v44 = vsel %vm366_vm7, %v387_v43, 0.0 }
 0x2f3   :  { %390 = vadd.xlane.f32.xlu0 %v389_v44  ;;  %v1723_v44 = vpack.c.bf16 %v556_v42, %v554_v41 }
 0x2f8   :  { %v1905_v45 = vpop.eup %1904 }
 0x2f9   :  { %v377_v46 = vmul.f32 %v1905_v45, %v1901_v30  ;;  %v553_v30 = vld [vmem:[%s2614_s1 + $0x2a8] sm:$0xff] }
 0x2fb   :  { %401 = vperm.xlu1 %1861, %v377_v46  }
 0x2ff   :  { %1863 = vset.pattern.permute.xlu1 %v1941_v47 }
 0x300   :  { %421 = vperm.xlu1 %1863, %v377_v46  }
 0x304   :  { %1864 = vset.pattern.permute.xlu1 %v1942_v48 }
 0x305   :  { %396 = vperm.xlu1 %1864, %v377_v46  }
 0x309   :  { %411 = vperm.xlu0 %1862, %v377_v46   ;;  %1865 = vset.pattern.permute.xlu1 %v1943_v49 }
 0x30d   :  { %1872 = vset.pattern.permute.xlu0 %v1944_v50 }
 0x35c   :  { %v480_v51 = vpop.xlane.xlu1 %479 }
 0x35d   :  { %1906 = vrcp.f32 %v480_v51 }
 0x367   :  { %v1907_v52 = vpop.eup %1906 }
 0x368   :  { %v482_v53 = vmul.f32 %v1907_v52, %v1899_v29  ;;  %v551_v29 = vld [vmem:[%s2614_s1 + $0x298] sm:$0xff] }
 0x369   :  { %v1717_v33 = vpack.c.bf16 %v553_v30, %v551_v29  ;;  %v661_v29 = vld [vmem:[%s2614_s1 + $0x3b0] sm:$0xff] }
 0x36a   :  { %490 = vperm.xlu1 %1865, %v482_v53  }
 0x36b   :  { %1718 = vmatprep.subr.bf16.mxu0 %v1717_v33 }
 0x36c   :  { %1720 = vmatpush1.bf16.msra.mxu0 %v1719_v39  ;;  %v666_v39 = vld [vmem:[%s2614_s1 + $0x400] sm:$0xff] }
 0x36e   :  { %1866 = vset.pattern.permute.xlu1 %v1945_v54 }
 0x36f   :  { %500 = vperm.xlu1 %1866, %v482_v53  }
 0x373   :  { %1867 = vset.pattern.permute.xlu1 %v1946_v55 }
 0x374   :  { %510 = vperm.xlu1 %1867, %v482_v53  }
 0x378   :  { %1868 = vset.pattern.permute.xlu1 %v1947_v56 }
 0x37a   :  { %v402_v58 = vpop.permute.xlu1 %401 }
 0x37b   :  { %v404_v9 = vmul.f32 %v402_v58, %v2155_v63 }
 0x37f   :  { %v422_v62 = vpop.permute.xlu1 %421 }
 0x380   :  { %v391_v57 = vpop.xlane.xlu0 %390  ;;  %v424_v1 = vmul.f32 %v422_v62, %v2155_v63 }
 0x381   :  { %1908 = vrcp.f32 %v391_v57 }
 0x384   :  { %v397_v13 = vpop.permute.xlu1 %396 }
 0x385   :  { %v399_v58 = vmul.f32 %v397_v13, %v2155_v63 }
 0x388   :  { %v412_v10 = vpop.permute.xlu0 %411 }
 0x389   :  { %v414_v12 = vmul.f32 %v412_v10, %v2155_v63  ;;  %v649_v10 = vld [vmem:[%s2614_s1 + $0x2f0] sm:$0xff] }
 0x38b   :  { %v1909_v59 = vpop.eup %1908 }
 0x38c   :  { %v393_v61 = vmul.f32 %v1909_v59, %v1903_v36  ;;  %v555_v36 = vld [vmem:[%s2614_s1 + $0x2b8] sm:$0xff] }
 0x38d   :  { %v1721_v40 = vpack.c.bf16 %v557_v38, %v555_v36  ;;  %v665_v36 = vld [vmem:[%s2614_s1 + $0x3f0] sm:$0xff] }
 0x38e   :  { %457 = vperm.xlu0 %1872, %v393_v61   ;;  %437 = vperm.xlu1 %1868, %v393_v61   ;;  %v1750_v38 = vpack.c.bf16 %v665_v36, %v664_v34 }
 0x38f   :  { %1722 = vmatprep.subr.bf16.mxu0 %v1721_v40  ;;  %v667_v40 = vld [vmem:[%s2614_s1 + $0x410] sm:$0xff] }
 0x390   :  { %1724 = vmatpush1.bf16.msra.mxu0 %v1723_v44  ;;  %v1753_v41 = vpack.c.bf16 %v667_v40, %v666_v39 }
 0x391   :  { %1761 = vmatprep.subr.bf16.mxu0 %v1934_v0 }
 0x392   :  { %1869 = vset.pattern.permute.xlu1 %v1948_v2  ;;  %426 = vrot.lane.b32.xlu0 %v424_v1, %s1949_s12 }
 0x393   :  { %520 = vperm.xlu1 %1869, %v482_v53   ;;  %1874 = vset.pattern.permute.xlu0 %v1950_v4 }
 0x396   :  { %432 = vperm.xlu0 %1874, %v393_v61  }
 0x397   :  { %1870 = vset.pattern.permute.xlu1 %v1951_v6 }
 0x398   :  { %447 = vperm.xlu1 %1870, %v393_v61  }
 0x39a   :  { %1876 = vset.pattern.permute.xlu0 %v1940_v37 }
 0x39c   :  { %1871 = vset.pattern.permute.xlu1 %v1952_v8 }
 0x39d   :  { %530 = vperm.xlu1 %1871, %v482_v53  }
 0x3a1   :  { %406 = vrot.lane.b32.xlu1 %v404_v9, %s1953_s13  ;;  %v648_v9 = vld [vmem:[%s2614_s1 + $0x2e0] sm:$0xff] }
 0x3a2   :  { %1873 = vset.pattern.permute.xlu1 %v1954_v11  ;;  %v1726_v13 = vpack.c.bf16 %v649_v10, %v648_v9 }
 0x3a4   :  { %1727 = vmatpush1.bf16.msra.mxu1 %v1726_v13  ;;  %v747_v13 = vld [vmem:[%s2614_s1 + $0x480] sm:$0xff] }
 0x3a5   :  { %416 = vrot.lane.b32.xlu1 %v414_v12, %s1955_s14  ;;  %v650_v12 = vld [vmem:[%s2614_s1 + $0x300] sm:$0xff]  ;;  %1728 = vmatprep.subr.bf16.mxu1 %v1934_v0 }
 0x3a9   :  { %485 = vperm.xlu1 %1873, %v482_v53  }
 0x3ad   :  { %1875 = vset.pattern.permute.xlu1 %v1938_v35 }
 0x3e9   :  { %v491_v14 = vpop.permute.xlu1 %490 }
 0x3ea   :  { %v493_v15 = vmul.f32 %v491_v14, %v2155_v63  ;;  %v651_v14 = vld [vmem:[%s2614_s1 + $0x310] sm:$0xff] }
 0x3ec   :  { %495 = vrot.lane.b32.xlu1 %v493_v15, %s1953_s13  ;;  %v1729_v15 = vpack.c.bf16 %v651_v14, %v650_v12  ;;  %v746_v12 = vld [vmem:[%s2614_s1 + $0x470] sm:$0xff] }
 0x3ee   :  { %v501_v16 = vpop.permute.xlu1 %500  ;;  %1730 = vmatpush1.bf16.msra.mxu1 %v1729_v15 }
 0x3ef   :  { %v503_v17 = vmul.f32 %v501_v16, %v2155_v63  ;;  %v652_v16 = vld [vmem:[%s2614_s1 + $0x320] sm:$0xff]  ;;  %1731 = vmatprep.subr.bf16.mxu1 %v1934_v0 }
 0x3f1   :  { %505 = vrot.lane.b32.xlu1 %v503_v17, %s1956_s15  ;;  %v653_v17 = vld [vmem:[%s2614_s1 + $0x330] sm:$0xff] }
 0x3f3   :  { %v511_v18 = vpop.permute.xlu1 %510 }
 0x3f4   :  { %v513_v19 = vmul.f32 %v511_v18, %v2155_v63  ;;  %v1732_v18 = vpack.c.bf16 %v653_v17, %v652_v16 }
 0x3f6   :  { %515 = vrot.lane.b32.xlu0 %v513_v19, %s1957_s16  ;;  %v654_v19 = vld [vmem:[%s2614_s1 + $0x340] sm:$0xff]  ;;  %1733 = vmatpush1.bf16.msra.mxu1 %v1732_v18 }
 0x3f7   :  { %1734 = vmatprep.subr.bf16.mxu1 %v1934_v0 }
 0x40d   :  { %v438_v20 = vpop.permute.xlu1 %437  ;;  %v458_v46 = vpop.permute.xlu0 %457 }
 0x40e   :  { %v440_v21 = vmul.f32 %v438_v20, %v2155_v63  ;;  %v460_v51 = vmul.f32 %v458_v46, %v2155_v63  ;;  %v655_v20 = vld [vmem:[%s2614_s1 + $0x350] sm:$0xff] }
 0x410   :  { %442 = vrot.lane.b32.xlu1 %v440_v21, %s1953_s13  ;;  %v1735_v21 = vpack.c.bf16 %v655_v20, %v654_v19  ;;  %v748_v19 = vld [vmem:[%s2614_s1 + $0x490] sm:$0xff]  ;;  %v749_v20 = vld [vmem:[%s2614_s1 + $0x4a0] sm:$0xff] }
 0x411   :  { %v427_v62 = vpop.permute.xlu0 %426  ;;  %v1765_v22 = vpack.c.bf16 %v749_v20, %v748_v19 }
 0x412   :  { %v521_v28 = vpop.permute.xlu1 %520  ;;  %1736 = vmatpush1.bf16.msra.mxu1 %v1735_v21 }
 0x413   :  { %v523_v32 = vmul.f32 %v521_v28, %v2155_v63  ;;  %1737 = vmatprep.subr.bf16.mxu1 %v1934_v0  ;;  %v660_v28 = vld [vmem:[%s2614_s1 + $0x3a0] sm:$0xff] }
 0x414   :  { %v1744_v30 = vpack.c.bf16 %v661_v29, %v660_v28  ;;  %v670_v29 = vld [vmem:[%s2614_s1 + $0x440] sm:$0xff] }
 0x415   :  { %525 = vrot.lane.b32.xlu0 %v523_v32, %s1955_s14  ;;  %v663_v32 = vld [vmem:[%s2614_s1 + $0x3d0] sm:$0xff] }
 0x416   :  { %1739 = vmatpush1.bf16.msra.mxu1 %v1738_v24  ;;  %v1747_v33 = vpack.c.bf16 %v663_v32, %v662_v31  ;;  %v751_v24 = vld [vmem:[%s2614_s1 + $0x4c0] sm:$0xff]  ;;  %v1550_v32 = vld [vmem:[%s2614_s1 + $0x2d0] ss:$8 sm:$0x3] }
 0x417   :  { %v448_v43 = vpop.permute.xlu1 %447  ;;  %1740 = vmatprep.subr.bf16.mxu1 %v1934_v0  ;;  %v1768_v25 = vpack.c.bf16 %v751_v24, %v750_v23  ;;  %v568_v34 = vrot.slane %v1550_v32, %v2126_v7 }
 0x418   :  { %v450_v45 = vmul.f32 %v448_v43, %v2155_v63 }
 0x41a   :  { %452 = vrot.lane.b32.xlu1 %v450_v45, %s1956_s15  ;;  %1742 = vmatpush1.bf16.msra.mxu1 %v1741_v27  ;;  %v433_v45 = vpop.permute.xlu0 %432  ;;  %v669_v27 = vld [vmem:[%s2614_s1 + $0x430] sm:$0xff] }
 0x41b   :  { %1743 = vmatprep.subr.bf16.mxu1 %v1934_v0  ;;  %v1756_v28 = vpack.c.bf16 %v669_v27, %v668_v26 }
 0x41c   :  { %v531_v52 = vpop.permute.xlu1 %530 }
 0x41d   :  { %v533_v53 = vmul.f32 %v531_v52, %v2155_v63 }
 0x41e   :  { %462 = vrot.lane.b32.xlu1 %v460_v51, %s1957_s16  ;;  %1745 = vmatpush1.bf16.msra.mxu1 %v1744_v30  ;;  %v671_v30 = vld [vmem:[%s2614_s1 + $0x450] sm:$0xff] }
 0x41f   :  { %535 = vrot.lane.b32.xlu0 %v533_v53, %s1949_s12  ;;  %1746 = vmatprep.subr.bf16.mxu1 %v1934_v0  ;;  %v1759_v31 = vpack.c.bf16 %v671_v30, %v670_v29 }
 0x420   :  { %v407_v57 = vpop.permute.xlu1 %406 }
 0x421   :  { %v409_v59 = vadd.f32 %v407_v57, %v399_v58 }
 0x422   :  { %1748 = vmatpush1.bf16.msra.mxu1 %v1747_v33  ;;  %v564_v33 = vrot.slane %v1550_v32, %v2121_v5 }
 0x423   :  { %1749 = vmatprep.subr.bf16.mxu1 %v1934_v0 }
 0x424   :  { %v417_v60 = vpop.permute.xlu1 %416 }
 0x425   :  { %v419_v61 = vadd.f32 %v417_v60, %v409_v59  ;;  %v435_v60 = vmul.f32 %v433_v45, %v2155_v63 }
 0x426   :  { %1751 = vmatpush1.bf16.msra.mxu1 %v1750_v38 }
 0x427   :  { %v429_v1 = vadd.f32 %v427_v62, %v419_v61  ;;  %1752 = vmatprep.subr.bf16.mxu1 %v1934_v0 }
 0x428   :  { %v486_v42 = vpop.permute.xlu1 %485 }
 0x429   :  { %540 = vrot.lane.b32.xlu0 %v429_v1, %s1958_s19  ;;  %v488_v52 = vmul.f32 %v486_v42, %v2155_v63  ;;  %v1762_v63 = vpack.c.bf16 %v747_v13, %v746_v12 }
 0x42a   :  { %1754 = vmatpush1.bf16.msra.mxu1 %v1753_v41 }
 0x42b   :  { %1755 = vmatprep.subr.bf16.mxu1 %v1934_v0 }
 0x42e   :  { %1757 = vmatpush1.bf16.msra.mxu1 %v1756_v28 }
 0x42f   :  { %1758 = vmatprep.subr.bf16.mxu1 %v1934_v0 }
 0x432   :  { %1760 = vmatpush1.bf16.msra.mxu1 %v1759_v31 }
 0x433   :  { %1782 = vmatprep.subr.bf16.mxu1 %v1934_v0 }
 0x45e   :  { %v496_v43 = vpop.permute.xlu1 %495 }
 0x45f   :  { %v498_v53 = vadd.f32 %v496_v43, %v488_v52  ;;  %v752_v43 = vld [vmem:[%s2614_s1 + $0x4d0] ss:$0 sm:$0xff] }
 0x463   :  { %v506_v44 = vpop.permute.xlu1 %505 }
 0x464   :  { %v508_v59 = vadd.f32 %v506_v44, %v498_v53 }
 0x468   :  { %v516_v51 = vpop.permute.xlu0 %515 }
 0x469   :  { %v518_v61 = vadd.f32 %v516_v51, %v508_v59 }
 0x482   :  { %v443_v46 = vpop.permute.xlu1 %442 }
 0x483   :  { %v445_v62 = vadd.f32 %v443_v46, %v435_v60 }
 0x487   :  { %v526_v58 = vpop.permute.xlu0 %525 }
 0x488   :  { %v528_v9 = vadd.f32 %v526_v58, %v518_v61 }
 0x48c   :  { %v453_v57 = vpop.permute.xlu1 %452 }
 0x48d   :  { %v455_v14 = vadd.f32 %v453_v57, %v445_v62 }
 0x490   :  { %v463_v10 = vpop.permute.xlu1 %462 }
 0x491   :  { %v536_v1 = vpop.permute.xlu0 %535  ;;  %v465_v16 = vadd.f32 %v463_v10, %v455_v14 }
 0x492   :  { %v538_v15 = vadd.f32 %v536_v1, %v528_v9 }
 0x49b   :  { %v541_v17 = vpop.permute.xlu0 %540 }
 0x49c   :  { %v544_v18 = vsel %vm543_vm9, %v538_v15, %v541_v17 }
 0x49d   :  { %v545_v21 = vsel %vm115_vm3, %v544_v18, %v465_v16 }
 0x49e   :  { %1551 = vmatmul.mubr.msk.f32.vlgmr.msra.gmra.mrb[4].mxu0 %vm571_vm10, %v545_v21 }
 0x49f   :  { %1763 = vmatpush3.bf16.msra.mxu0 %v1762_v63  ;;  %1624 = vmatprep.mubr.msk.f32.mxu0 %vm1935_vm0, %v1936_v3 }
 0x4a0   :  { %1764 = vmatprep.subr.bf16.mxu0 %v1934_v0 }
 0x4a3   :  { %1766 = vmatpush3.bf16.msra.mxu0 %v1765_v22 }
 0x4a4   :  { %1767 = vmatprep.subr.bf16.mxu0 %v1934_v0 }
 0x4a7   :  { %1769 = vmatpush3.bf16.msra.mxu0 %v1768_v25 }
 0x4aa   :  { %1625 = vmatmul.mubr.msk.f32.vlgmr.msra.gmra.mrb[6].mxu0 %vm571_vm10, %v545_v21 }
 0x4ab   :  { %1090 = vmatprep.mubr.f32.mxu0 %v1936_v3 }
 0x571   :  { %v641_v36 = vpop.f32.mrb[4].mxu0 }
 0x572   :  { %v642_v38 = vadd.f32 %v641_v36, %v564_v33  ;;  %v643_v39 = vpop.f32.mrb[5].mxu0 }
 0x573   :  { %v644_v40 = vadd.f32 %v643_v39, %v568_v34 }
 0x574   :  { %v646_v42 = vmax.f32 %v642_v38, 0.0 }
 0x575   :  { %v647_v41 = vmax.f32 %v644_v40, 0.0 }
 0x577   :  { %1552 = vmatprep.mubr.msk.f32.mxu1 %vm217_vm4, %v647_v41 }
 0x578   :  { %741 = vmatmul.mubr.f32.vlgmr.msra.gmra.mrb[4].mxu1 %v646_v42  ;;  %v1001_v42 = vld [vmem:[%s2614_s1 + $0x4f8] sm:$0xff] }
 0x57d   :  { %v819_v44 = vpop.f32.mrb[6].mxu0 }
 0x57e   :  { %v820_v45 = vadd.f32 %v819_v44, %v752_v43  ;;  %v1626_v46 = vpop.f32.mrb[7].mxu0  ;;  %v998_v44 = vld [vmem:[%s2614_s1 + $0x4e0] sm:$0xff] }
 0x580   :  { %v921_v51 = vsel %vm466_vm5, %v820_v45, -inf  ;;  %v823_v52 = vsel %vm366_vm7, %v820_v45, -inf  ;;  %v834_v53 = vsel %vm378_vm6, %v820_v45, -inf }
 0x581   :  { %922 = vmax.xlane.f32.xlu1 %v921_v51  ;;  %824 = vmax.xlane.f32.xlu0 %v823_v52  ;;  %v1003_v52 = vld [vmem:[%s2614_s1 + $0x508] sm:$0xff] }
 0x585   :  { %835 = vmax.xlane.f32.xlu0 %v834_v53  ;;  %v1005_v53 = vld [vmem:[%s2614_s1 + $0x518] sm:$0xff] }
 0x60e   :  { %v923_v57 = vpop.xlane.xlu1 %922  ;;  %v825_v58 = vpop.xlane.xlu0 %824 }
 0x60f   :  { %v924_v59 = vsub.f32 %v820_v45, %v923_v57  ;;  %v826_v60 = vsub.f32 %v820_v45, %v825_v58  ;;  %v1002_v57 = vld [vmem:[%s2614_s1 + $0x500] sm:$0xff] }
 0x611   :  { %v925_v61 = vmul.f32 1.442695, %v924_v59  ;;  %v827_v62 = vmul.f32 1.442695, %v826_v60  ;;  %v1774_v59 = vpack.c.bf16 %v1005_v53, %v1003_v52  ;;  %v1004_v60 = vld [vmem:[%s2614_s1 + $0x510] sm:$0xff]  ;;  %v1118_v53 = vld [vmem:[%s2614_s1 + $0x680] sm:$0xff] }
 0x612   :  { %v836_v12 = vpop.xlane.xlu0 %835  ;;  %v1117_v52 = vld [vmem:[%s2614_s1 + $0x670] sm:$0xff] }
 0x613   :  { %1910 = vpow2.f32 %v925_v61  ;;  %v837_v13 = vsub.f32 %v820_v45, %v836_v12  ;;  %v1000_v45 = vld [vmem:[%s2614_s1 + $0x4f0] sm:$0xff]  ;;  %v1007_v61 = vld [vmem:[%s2614_s1 + $0x528] sm:$0xff] }
 0x614   :  { %1912 = vpow2.f32 %v827_v62  ;;  %v1772_v46 = vpack.c.bf16 %v1000_v45, %v998_v44  ;;  %v1009_v62 = vld [vmem:[%s2614_s1 + $0x538] sm:$0xff]  ;;  %v1008_v12 = vld [vmem:[%s2614_s1 + $0x530] sm:$0xff] }
 0x615   :  { %v838_v14 = vmul.f32 1.442695, %v837_v13  ;;  %v1115_v45 = vld [vmem:[%s2614_s1 + $0x650] sm:$0xff] }
 0x617   :  { %1914 = vpow2.f32 %v838_v14 }
 0x61d   :  { %v1911_v1 = vpop.eup %1910 }
 0x61e   :  { %v1913_v9 = vpop.eup %1912  ;;  %928 = vrot.lane.b32.xlu1 %v1911_v1, %s1937_s0 }
 0x61f   :  { %v829_v10 = vsel %vm366_vm7, %v1913_v9, 0.0 }
 0x620   :  { %830 = vadd.xlane.f32.xlu0 %v829_v10  ;;  %v1006_v10 = vld [vmem:[%s2614_s1 + $0x520] sm:$0xff] }
 0x621   :  { %v1915_v15 = vpop.eup %1914  ;;  %v1780_v13 = vpack.c.bf16 %v1008_v12, %v1006_v10 }
 0x636   :  { %841 = vrot.lane.b32.xlu0 %v1915_v15, %s1939_s9 }
 0x64b   :  { %v742_v16 = vpop.f32.mrb[4].mxu1 }
 0x64c   :  { %v744_v17 = vpop.f32.mrb[5].mxu1 }
 0x690   :  { %v929_v63 = vpop.permute.xlu1 %928 }
 0x691   :  { %v931_v18 = vsel %vm477_vm8, %v929_v63, 0.0 }
 0x692   :  { %932 = vadd.xlane.f32.xlu1 %v931_v18 }
 0x6ad   :  { %v831_v19 = vpop.xlane.xlu0 %830 }
 0x6ae   :  { %1916 = vrcp.f32 %v831_v19 }
 0x6b1   :  { %v842_v20 = vpop.permute.xlu0 %841 }
 0x6b2   :  { %v844_v21 = vsel %vm366_vm7, %v842_v20, 0.0 }
 0x6b3   :  { %845 = vadd.xlane.f32.xlu0 %v844_v21 }
 0x6b8   :  { %v1917_v22 = vpop.eup %1916 }
 0x6b9   :  { %v833_v23 = vmul.f32 %v1917_v22, %v1913_v9  ;;  %v1778_v9 = vpack.c.bf16 %v1009_v62, %v1007_v61 }
 0x6bb   :  { %856 = vperm.xlu1 %1875, %v833_v23  }
 0x6bf   :  { %1877 = vset.pattern.permute.xlu1 %v1941_v47 }
 0x6c0   :  { %876 = vperm.xlu1 %1877, %v833_v23  }
 0x6c4   :  { %1878 = vset.pattern.permute.xlu1 %v1942_v48 }
 0x6c5   :  { %851 = vperm.xlu1 %1878, %v833_v23  }
 0x6c9   :  { %866 = vperm.xlu0 %1876, %v833_v23   ;;  %1879 = vset.pattern.permute.xlu1 %v1943_v49  ;;  %v672_v49 = vld [vmem:[%s2614_s1 + $0x460] ss:$0 sm:$0xff] }
 0x6ca   :  { %v2365_v32 = vadd.f32 %v742_v16, %v672_v49  ;;  %v1102_v49 = vld [vmem:[%s2614_s1 + $0x580] sm:$0xff] }
 0x6cd   :  { %1886 = vset.pattern.permute.xlu0 %v1944_v50 }
 0x71f   :  { %v933_v24 = vpop.xlane.xlu1 %932 }
 0x720   :  { %1918 = vrcp.f32 %v933_v24 }
 0x72a   :  { %v1919_v25 = vpop.eup %1918 }
 0x72b   :  { %v935_v26 = vmul.f32 %v1919_v25, %v1911_v1  ;;  %v1776_v1 = vpack.c.bf16 %v1004_v60, %v1002_v57  ;;  %v1810_v57 = vpack.c.bf16 %v1118_v53, %v1117_v52 }
 0x72d   :  { %943 = vperm.xlu1 %1879, %v935_v26  }
 0x731   :  { %1880 = vset.pattern.permute.xlu1 %v1945_v54 }
 0x732   :  { %953 = vperm.xlu1 %1880, %v935_v26  }
 0x736   :  { %1881 = vset.pattern.permute.xlu1 %v1946_v55 }
 0x737   :  { %963 = vperm.xlu1 %1881, %v935_v26  }
 0x73a   :  { %v857_v28 = vpop.permute.xlu1 %856 }
 0x73b   :  { %1882 = vset.pattern.permute.xlu1 %v1947_v56  ;;  %v859_v55 = vmul.f32 %v857_v28, %v2365_v32  ;;  %v1101_v28 = vld [vmem:[%s2614_s1 + $0x570] sm:$0xff] }
 0x73f   :  { %v877_v31 = vpop.permute.xlu1 %876 }
 0x740   :  { %v846_v27 = vpop.xlane.xlu0 %845  ;;  %v879_v54 = vmul.f32 %v877_v31, %v2365_v32  ;;  %v1103_v31 = vld [vmem:[%s2614_s1 + $0x590] sm:$0xff] }
 0x741   :  { %1920 = vrcp.f32 %v846_v27  ;;  %v1100_v27 = vld [vmem:[%s2614_s1 + $0x560] sm:$0xff] }
 0x744   :  { %v852_v34 = vpop.permute.xlu1 %851 }
 0x745   :  { %v854_v20 = vmul.f32 %v852_v34, %v2365_v32 }
 0x748   :  { %v867_v33 = vpop.permute.xlu0 %866 }
 0x74b   :  { %v1921_v29 = vpop.eup %1920 }
 0x74c   :  { %v848_v30 = vmul.f32 %v1921_v29, %v1915_v15 }
 0x74e   :  { %912 = vperm.xlu0 %1886, %v848_v30   ;;  %892 = vperm.xlu1 %1882, %v848_v30  }
 0x752   :  { %1883 = vset.pattern.permute.xlu1 %v1948_v2  ;;  %881 = vrot.lane.b32.xlu0 %v879_v54, %s1949_s12  ;;  %v869_v2 = vmul.f32 %v867_v33, %v2365_v32  ;;  %v1104_v54 = vld [vmem:[%s2614_s1 + $0x5a0] sm:$0xff]  ;;  %v1105_v33 = vld [vmem:[%s2614_s1 + $0x5b0] sm:$0xff] }
 0x753   :  { %973 = vperm.xlu1 %1883, %v935_v26   ;;  %1888 = vset.pattern.permute.xlu0 %v1950_v4 }
 0x756   :  { %887 = vperm.xlu0 %1888, %v848_v30  }
 0x757   :  { %1884 = vset.pattern.permute.xlu1 %v1951_v6 }
 0x758   :  { %902 = vperm.xlu1 %1884, %v848_v30   ;;  %v1786_v30 = vpack.c.bf16 %v1102_v49, %v1101_v28  ;;  %v1200_v28 = vld [vmem:[%s2614_s1 + $0x710] sm:$0xff] }
 0x75a   :  { %1889 = vset.pattern.permute.xlu0 %v1947_v56 }
 0x75c   :  { %1885 = vset.pattern.permute.xlu1 %v1952_v8 }
 0x75d   :  { %983 = vperm.xlu1 %1885, %v935_v26  }
 0x761   :  { %861 = vrot.lane.b32.xlu1 %v859_v55, %s1953_s13  ;;  %v1789_v55 = vpack.c.bf16 %v1104_v54, %v1103_v31  ;;  %v1202_v31 = vld [vmem:[%s2614_s1 + $0x730] sm:$0xff] }
 0x762   :  { %1887 = vset.pattern.permute.xlu1 %v1954_v11 }
 0x765   :  { %871 = vrot.lane.b32.xlu1 %v869_v2, %s1955_s14  ;;  %v1106_v2 = vld [vmem:[%s2614_s1 + $0x5c0] sm:$0xff] }
 0x766   :  { %v1792_v34 = vpack.c.bf16 %v1106_v2, %v1105_v33  ;;  %v1120_v33 = vld [vmem:[%s2614_s1 + $0x6a0] sm:$0xff] }
 0x769   :  { %938 = vperm.xlu1 %1887, %v935_v26   ;;  %v1099_v26 = vld [vmem:[%s2614_s1 + $0x550] sm:$0xff] }
 0x76a   :  { %v1783_v29 = vpack.c.bf16 %v1100_v27, %v1099_v26  ;;  %v1199_v27 = vld [vmem:[%s2614_s1 + $0x700] sm:$0xff] }
 0x76b   :  { %v1822_v49 = vpack.c.bf16 %v1200_v28, %v1199_v27  ;;  %v1380_v28 = vld [vmem:[%s2614_s1 + $0x780] sm:$0xff] }
 0x76c   :  { %1784 = vmatpush1.bf16.msra.mxu1 %v1783_v29 }
 0x76d   :  { %1890 = vset.pattern.permute.xlu1 %v1951_v6  ;;  %v999_v6 = vld [vmem:[%s2614_s1 + $0x4e8] sm:$0xff]  ;;  %1785 = vmatprep.subr.bf16.mxu1 %v1934_v0 }
 0x76e   :  { %v1770_v43 = vpack.c.bf16 %v1001_v42, %v999_v6  ;;  %v1113_v42 = vld [vmem:[%s2614_s1 + $0x630] sm:$0xff] }
 0x770   :  { %1771 = vmatprep.subr.bf16.mxu0 %v1770_v43  ;;  %1787 = vmatpush1.bf16.msra.mxu1 %v1786_v30  ;;  %v1114_v43 = vld [vmem:[%s2614_s1 + $0x640] sm:$0xff] }
 0x771   :  { %1773 = vmatpush1.bf16.msra.mxu0 %v1772_v46  ;;  %1788 = vmatprep.subr.bf16.mxu1 %v1934_v0  ;;  %v1804_v44 = vpack.c.bf16 %v1114_v43, %v1113_v42  ;;  %v1116_v46 = vld [vmem:[%s2614_s1 + $0x660] sm:$0xff] }
 0x772   :  { %1775 = vmatprep.subr.bf16.mxu0 %v1774_v59  ;;  %v1201_v30 = vld [vmem:[%s2614_s1 + $0x720] sm:$0xff] }
 0x773   :  { %v1825_v54 = vpack.c.bf16 %v1202_v31, %v1201_v30 }
 0x774   :  { %1790 = vmatpush1.bf16.msra.mxu1 %v1789_v55  ;;  %v1119_v55 = vld [vmem:[%s2614_s1 + $0x690] sm:$0xff] }
 0x775   :  { %1777 = vmatpush1.bf16.msra.mxu0 %v1776_v1  ;;  %1791 = vmatprep.subr.bf16.mxu1 %v1934_v0  ;;  %v1813_v2 = vpack.c.bf16 %v1120_v33, %v1119_v55 }
 0x776   :  { %1779 = vmatprep.subr.bf16.mxu0 %v1778_v9 }
 0x778   :  { %1793 = vmatpush1.bf16.msra.mxu1 %v1792_v34  ;;  %v1121_v34 = vld [vmem:[%s2614_s1 + $0x6b0] sm:$0xff] }
 0x779   :  { %1781 = vmatpush1.bf16.msra.mxu0 %v1780_v13  ;;  %1794 = vmatprep.subr.bf16.mxu1 %v1934_v0 }
 0x77a   :  { %1818 = vmatprep.subr.bf16.mxu0 %v1934_v0 }
 0x7ac   :  { %v944_v36 = vpop.permute.xlu1 %943 }
 0x7ad   :  { %v946_v56 = vmul.f32 %v944_v36, %v2365_v32  ;;  %v1107_v36 = vld [vmem:[%s2614_s1 + $0x5d0] sm:$0xff] }
 0x7af   :  { %948 = vrot.lane.b32.xlu1 %v946_v56, %s1953_s13  ;;  %v1108_v56 = vld [vmem:[%s2614_s1 + $0x5e0] sm:$0xff] }
 0x7b1   :  { %v954_v8 = vpop.permute.xlu1 %953 }
 0x7b2   :  { %v956_v38 = vmul.f32 %v954_v8, %v2365_v32  ;;  %v1795_v8 = vpack.c.bf16 %v1108_v56, %v1107_v36  ;;  %v1122_v36 = vld [vmem:[%s2614_s1 + $0x6c0] sm:$0xff] }
 0x7b3   :  { %v1816_v56 = vpack.c.bf16 %v1122_v36, %v1121_v34 }
 0x7b4   :  { %958 = vrot.lane.b32.xlu1 %v956_v38, %s1956_s15  ;;  %v1109_v38 = vld [vmem:[%s2614_s1 + $0x5f0] sm:$0xff]  ;;  %1796 = vmatpush1.bf16.msra.mxu1 %v1795_v8  ;;  %v1554_v8 = vld [vmem:[%s2614_s1 + $0x540] ss:$8 sm:$0x3] }
 0x7b5   :  { %1797 = vmatprep.subr.bf16.mxu1 %v1934_v0 }
 0x7b6   :  { %v964_v39 = vpop.permute.xlu1 %963 }
 0x7b7   :  { %v966_v11 = vmul.f32 %v964_v39, %v2365_v32  ;;  %v1110_v39 = vld [vmem:[%s2614_s1 + $0x600] sm:$0xff] }
 0x7b9   :  { %968 = vrot.lane.b32.xlu0 %v966_v11, %s1957_s16  ;;  %v1798_v11 = vpack.c.bf16 %v1110_v39, %v1109_v38  ;;  %v1016_v38 = vrot.slane %v1554_v8, %v2121_v5  ;;  %v1020_v39 = vrot.slane %v1554_v8, %v2126_v7 }
 0x7bb   :  { %1799 = vmatpush1.bf16.msra.mxu1 %v1798_v11 }
 0x7bc   :  { %1800 = vmatprep.subr.bf16.mxu1 %v1934_v0 }
 0x7cd   :  { %v893_v40 = vpop.permute.xlu1 %892  ;;  %v913_v16 = vpop.permute.xlu0 %912 }
 0x7ce   :  { %v895_v41 = vmul.f32 %v893_v40, %v2365_v32  ;;  %v915_v17 = vmul.f32 %v913_v16, %v2365_v32  ;;  %v1111_v40 = vld [vmem:[%s2614_s1 + $0x610] sm:$0xff] }
 0x7d0   :  { %897 = vrot.lane.b32.xlu1 %v895_v41, %s1953_s13  ;;  %v1112_v41 = vld [vmem:[%s2614_s1 + $0x620] sm:$0xff] }
 0x7d1   :  { %v882_v24 = vpop.permute.xlu0 %881  ;;  %v1801_v6 = vpack.c.bf16 %v1112_v41, %v1111_v40 }
 0x7d2   :  { %v974_v51 = vpop.permute.xlu1 %973 }
 0x7d3   :  { %v976_v58 = vmul.f32 %v974_v51, %v2365_v32  ;;  %1802 = vmatpush1.bf16.msra.mxu1 %v1801_v6  ;;  %v1807_v51 = vpack.c.bf16 %v1116_v46, %v1115_v45 }
 0x7d4   :  { %1803 = vmatprep.subr.bf16.mxu1 %v1934_v0 }
 0x7d5   :  { %978 = vrot.lane.b32.xlu0 %v976_v58, %s1955_s14  ;;  %v888_v61 = vpop.permute.xlu0 %887 }
 0x7d7   :  { %v903_v14 = vpop.permute.xlu1 %902  ;;  %1805 = vmatpush1.bf16.msra.mxu1 %v1804_v44  ;;  %v1203_v44 = vld [vmem:[%s2614_s1 + $0x740] ss:$0 sm:$0xff] }
 0x7d8   :  { %v905_v15 = vmul.f32 %v903_v14, %v2365_v32  ;;  %1806 = vmatprep.subr.bf16.mxu1 %v1934_v0 }
 0x7da   :  { %907 = vrot.lane.b32.xlu1 %v905_v15, %s1956_s15  ;;  %v890_v15 = vmul.f32 %v888_v61, %v2365_v32 }
 0x7db   :  { %1808 = vmatpush1.bf16.msra.mxu1 %v1807_v51 }
 0x7dc   :  { %v984_v63 = vpop.permute.xlu1 %983  ;;  %1809 = vmatprep.subr.bf16.mxu1 %v1934_v0 }
 0x7dd   :  { %v986_v18 = vmul.f32 %v984_v63, %v2365_v32 }
 0x7de   :  { %917 = vrot.lane.b32.xlu1 %v915_v17, %s1957_s16 }
 0x7df   :  { %988 = vrot.lane.b32.xlu0 %v986_v18, %s1949_s12  ;;  %1811 = vmatpush1.bf16.msra.mxu1 %v1810_v57 }
 0x7e0   :  { %v862_v19 = vpop.permute.xlu1 %861  ;;  %1812 = vmatprep.subr.bf16.mxu1 %v1934_v0 }
 0x7e1   :  { %v864_v21 = vadd.f32 %v862_v19, %v854_v20  ;;  %v1197_v20 = vld [vmem:[%s2614_s1 + $0x6e0] sm:$0xff] }
 0x7e3   :  { %1814 = vmatpush1.bf16.msra.mxu1 %v1813_v2 }
 0x7e4   :  { %v872_v22 = vpop.permute.xlu1 %871  ;;  %1815 = vmatprep.subr.bf16.mxu1 %v1934_v0 }
 0x7e5   :  { %v874_v23 = vadd.f32 %v872_v22, %v864_v21  ;;  %v1198_v21 = vld [vmem:[%s2614_s1 + $0x6f0] sm:$0xff] }
 0x7e6   :  { %v1819_v26 = vpack.c.bf16 %v1198_v21, %v1197_v20 }
 0x7e7   :  { %v884_v25 = vadd.f32 %v882_v24, %v874_v23  ;;  %1817 = vmatpush1.bf16.msra.mxu1 %v1816_v56 }
 0x7e8   :  { %v939_v58 = vpop.permute.xlu1 %938 }
 0x7e9   :  { %993 = vrot.lane.b32.xlu0 %v884_v25, %s1958_s19  ;;  %v941_v9 = vmul.f32 %v939_v58, %v2365_v32 }
 0x821   :  { %v949_v59 = vpop.permute.xlu1 %948 }
 0x822   :  { %v951_v10 = vadd.f32 %v949_v59, %v941_v9 }
 0x826   :  { %v959_v60 = vpop.permute.xlu1 %958 }
 0x827   :  { %v961_v14 = vadd.f32 %v959_v60, %v951_v10 }
 0x82b   :  { %v969_v1 = vpop.permute.xlu0 %968 }
 0x82c   :  { %v971_v16 = vadd.f32 %v969_v1, %v961_v14 }
 0x842   :  { %v898_v62 = vpop.permute.xlu1 %897 }
 0x843   :  { %v900_v17 = vadd.f32 %v898_v62, %v890_v15 }
 0x847   :  { %v979_v13 = vpop.permute.xlu0 %978 }
 0x848   :  { %v981_v18 = vadd.f32 %v979_v13, %v971_v16 }
 0x84c   :  { %v908_v12 = vpop.permute.xlu1 %907 }
 0x84d   :  { %v910_v22 = vadd.f32 %v908_v12, %v900_v17 }
 0x850   :  { %v918_v19 = vpop.permute.xlu1 %917 }
 0x851   :  { %v989_v63 = vpop.permute.xlu0 %988  ;;  %v920_v24 = vadd.f32 %v918_v19, %v910_v22 }
 0x852   :  { %v991_v23 = vadd.f32 %v989_v63, %v981_v18 }
 0x85b   :  { %v994_v25 = vpop.permute.xlu0 %993 }
 0x85c   :  { %v996_v32 = vsel %vm543_vm9, %v991_v23, %v994_v25  ;;  %v1378_v25 = vld [vmem:[%s2614_s1 + $0x760] sm:$0xff] }
 0x85d   :  { %v997_v29 = vsel %vm115_vm3, %v996_v32, %v920_v24  ;;  %v1377_v24 = vld [vmem:[%s2614_s1 + $0x750] sm:$0xff] }
 0x85e   :  { %1555 = vmatmul.mubr.msk.f32.vlgmr.msra.gmra.mrb[8].mxu0 %vm571_vm10, %v997_v29  ;;  %v1828_v27 = vpack.c.bf16 %v1378_v25, %v1377_v24 }
 0x85f   :  { %1820 = vmatpush3.bf16.msra.mxu0 %v1819_v26  ;;  %1639 = vmatprep.mubr.msk.f32.mxu0 %vm1935_vm0, %v1936_v3  ;;  %v1379_v26 = vld [vmem:[%s2614_s1 + $0x770] sm:$0xff] }
 0x860   :  { %1821 = vmatprep.subr.bf16.mxu0 %v1934_v0 }
 0x863   :  { %1823 = vmatpush3.bf16.msra.mxu0 %v1822_v49 }
 0x864   :  { %1824 = vmatprep.subr.bf16.mxu0 %v1934_v0 }
 0x867   :  { %1826 = vmatpush3.bf16.msra.mxu0 %v1825_v54 }
 0x868   :  { %1827 = vmatprep.subr.bf16.mxu0 %v1934_v0 }
 0x86a   :  { %1640 = vmatmul.mubr.msk.f32.vlgmr.msra.gmra.mrb[10].mxu0 %vm571_vm10, %v997_v29  ;;  %v1831_v29 = vpack.c.bf16 %v1380_v28, %v1379_v26 }
 0x86b   :  { %1650 = vmatprep.mubr.msk.f32.mxu0 %vm1935_vm0, %v1936_v3  ;;  %1829 = vmatpush3.bf16.msra.mxu0 %v1828_v27 }
 0x86c   :  { %1830 = vmatprep.subr.bf16.mxu0 %v1934_v0 }
 0x86f   :  { %1832 = vmatpush3.bf16.msra.mxu0 %v1831_v29 }
 0x870   :  { %1833 = vmatprep.subr.bf16.mxu0 %v1934_v0 }
 0x931   :  { %v1092_v11 = vpop.f32.mrb[8].mxu0 }
 0x932   :  { %v1093_v40 = vadd.f32 %v1092_v11, %v1016_v38  ;;  %v1094_v41 = vpop.f32.mrb[9].mxu0 }
 0x933   :  { %v1095_v6 = vadd.f32 %v1094_v41, %v1020_v39 }
 0x934   :  { %v1097_v43 = vmax.f32 %v1093_v40, 0.0 }
 0x935   :  { %v1098_v42 = vmax.f32 %v1095_v6, 0.0 }
 0x937   :  { %1556 = vmatprep.mubr.msk.f32.mxu1 %vm217_vm4, %v1098_v42 }
 0x938   :  { %1192 = vmatmul.mubr.f32.vlgmr.msra.gmra.mrb[6].mxu1 %v1097_v43 }
 0x93d   :  { %v1270_v45 = vpop.f32.mrb[10].mxu0 }
 0x93e   :  { %v1271_v46 = vadd.f32 %v1270_v45, %v1203_v44  ;;  %v1641_v51 = vpop.f32.mrb[11].mxu0  ;;  %v1456_v44 = vld [vmem:[%s2614_s1 + $0x7a0] sm:$0xff]  ;;  %v1457_v45 = vld [vmem:[%s2614_s1 + $0x7b0] sm:$0xff] }
 0x93f   :  { %v1381_v51 = vld [vmem:[%s2614_s1 + $0x790] ss:$0 sm:$0xff] }
 0x940   :  { %v1285_v5 = vsel %vm378_vm6, %v1271_v46, -inf  ;;  %v1274_v58 = vsel %vm366_vm7, %v1271_v46, -inf }
 0x941   :  { %1286 = vmax.xlane.f32.xlu1 %v1285_v5 }
 0x9ce   :  { %v1287_v7 = vpop.xlane.xlu1 %1286 }
 0x9cf   :  { %v1288_v52 = vsub.f32 %v1271_v46, %v1287_v7 }
 0x9d1   :  { %v1289_v53 = vmul.f32 1.442695, %v1288_v52 }
 0x9d3   :  { %1922 = vpow2.f32 %v1289_v53 }
 0x9dd   :  { %v1923_v57 = vpop.eup %1922 }
 0x9de   :  { %1292 = vrot.lane.b32.xlu0 %v1923_v57, %s1939_s9 }
 0x9fd   :  { %1275 = vmax.xlane.f32.xlu0 %v1274_v58 }
 0xa0b   :  { %v1193_v59 = vpop.f32.mrb[6].mxu1 }
 0xa0c   :  { %v1195_v60 = vpop.f32.mrb[7].mxu1 }
 0xa50   :  { %v1293_v61 = vpop.permute.xlu0 %1292 }
 0xa51   :  { %v1295_v62 = vsel %vm366_vm7, %v1293_v61, 0.0 }
 0xa52   :  { %1296 = vadd.xlane.f32.xlu0 %v1295_v62 }
 0xa8a   :  { %v1276_v1 = vpop.xlane.xlu0 %1275 }
 0xa8b   :  { %v1277_v9 = vsub.f32 %v1271_v46, %v1276_v1  ;;  %v1834_v46 = vpack.c.bf16 %v1457_v45, %v1456_v44 }
 0xa8d   :  { %v1278_v10 = vmul.f32 1.442695, %v1277_v9 }
 0xa8f   :  { %1924 = vpow2.f32 %v1278_v10 }
 0xa99   :  { %v1925_v12 = vpop.eup %1924 }
 0xa9a   :  { %v1280_v13 = vsel %vm366_vm7, %v1925_v12, 0.0 }
 0xa9b   :  { %1281 = vadd.xlane.f32.xlu1 %v1280_v13 }
 0xadf   :  { %v1297_v14 = vpop.xlane.xlu0 %1296 }
 0xae0   :  { %1926 = vrcp.f32 %v1297_v14 }
 0xaea   :  { %v1927_v15 = vpop.eup %1926 }
 0xaeb   :  { %v1299_v16 = vmul.f32 %v1927_v15, %v1923_v57 }
 0xaed   :  { %1353 = vperm.xlu1 %1890, %v1299_v16   ;;  %1343 = vperm.xlu0 %1889, %v1299_v16  }
 0xaf1   :  { %1891 = vset.pattern.permute.xlu1 %v1944_v50  ;;  %1897 = vset.pattern.permute.xlu0 %v1944_v50 }
 0xaf2   :  { %1363 = vperm.xlu1 %1891, %v1299_v16  }
 0xaf6   :  { %1892 = vset.pattern.permute.xlu1 %v1938_v35  ;;  %v1123_v35 = vld [vmem:[%s2614_s1 + $0x6d0] ss:$0 sm:$0xff] }
 0xaf7   :  { %v1194_v50 = vadd.f32 %v1193_v59, %v1123_v35 }
 0xb28   :  { %v1282_v17 = vpop.xlane.xlu1 %1281 }
 0xb29   :  { %1928 = vrcp.f32 %v1282_v17 }
 0xb33   :  { %v1929_v63 = vpop.eup %1928 }
 0xb34   :  { %v1284_v18 = vmul.f32 %v1929_v63, %v1925_v12 }
 0xb36   :  { %1307 = vperm.xlu1 %1892, %v1284_v18  }
 0xb3a   :  { %1893 = vset.pattern.permute.xlu1 %v1940_v37 }
 0xb3b   :  { %1317 = vperm.xlu1 %1893, %v1284_v18  }
 0xb3f   :  { %1894 = vset.pattern.permute.xlu1 %v1950_v4 }
 0xb40   :  { %1338 = vperm.xlu1 %1894, %v1299_v16  }
 0xb44   :  { %1895 = vset.pattern.permute.xlu1 %v1941_v47 }
 0xb45   :  { %1327 = vperm.xlu1 %1895, %v1284_v18  }
 0xb49   :  { %1896 = vset.pattern.permute.xlu1 %v1942_v48 }
 0xb6c   :  { %v1354_v19 = vpop.permute.xlu1 %1353  ;;  %v1344_v20 = vpop.permute.xlu0 %1343 }
 0xb6d   :  { %v1346_v21 = vmul.f32 %v1344_v20, %v1194_v50  ;;  %v1356_v37 = vmul.f32 %v1354_v19, %v1194_v50 }
 0xb6f   :  { %1348 = vrot.lane.b32.xlu1 %v1346_v21, %s1953_s13 }
 0xb71   :  { %v1364_v22 = vpop.permute.xlu1 %1363 }
 0xb72   :  { %v1366_v23 = vmul.f32 %v1364_v22, %v1194_v50 }
 0xb73   :  { %1358 = vrot.lane.b32.xlu1 %v1356_v37, %s1956_s15 }
 0xb74   :  { %1368 = vrot.lane.b32.xlu0 %v1366_v23, %s1957_s16 }
 0xb77   :  { %1302 = vperm.xlu1 %1896, %v1284_v18  }
 0xbb5   :  { %v1308_v47 = vpop.permute.xlu1 %1307 }
 0xbb6   :  { %v1310_v48 = vmul.f32 %v1308_v47, %v1194_v50 }
 0xbb8   :  { %1312 = vrot.lane.b32.xlu0 %v1310_v48, %s1953_s13 }
 0xbba   :  { %v1318_v4 = vpop.permute.xlu1 %1317 }
 0xbbb   :  { %v1320_v32 = vmul.f32 %v1318_v4, %v1194_v50 }
 0xbbd   :  { %1322 = vrot.lane.b32.xlu1 %v1320_v32, %s1955_s14 }
 0xbbf   :  { %v1339_v49 = vpop.permute.xlu1 %1338 }
 0xbc0   :  { %v1341_v55 = vmul.f32 %v1339_v49, %v1194_v50 }
 0xbc4   :  { %v1328_v30 = vpop.permute.xlu1 %1327 }
 0xbc5   :  { %v1330_v31 = vmul.f32 %v1328_v30, %v1194_v50 }
 0xbc7   :  { %1332 = vrot.lane.b32.xlu0 %v1330_v31, %s1949_s12 }
 0xbe1   :  { %v1349_v54 = vpop.permute.xlu1 %1348 }
 0xbe2   :  { %v1351_v33 = vadd.f32 %v1349_v54, %v1341_v55 }
 0xbe5   :  { %v1359_v2 = vpop.permute.xlu1 %1358 }
 0xbe6   :  { %v1361_v34 = vadd.f32 %v1359_v2, %v1351_v33  ;;  %v1369_v36 = vpop.permute.xlu0 %1368 }
 0xbe8   :  { %v1371_v56 = vadd.f32 %v1369_v36, %v1361_v34 }
 0xbea   :  { %1373 = vrot.lane.b32.xlu1 %v1371_v56, %s1953_s13 }
 0xbf6   :  { %v1303_v8 = vpop.permute.xlu1 %1302 }
 0xbf7   :  { %v1305_v39 = vmul.f32 %v1303_v8, %v1194_v50 }
 0xc2a   :  { %v1313_v38 = vpop.permute.xlu0 %1312 }
 0xc2b   :  { %v1315_v40 = vadd.f32 %v1313_v38, %v1305_v39 }
 0xc2f   :  { %v1323_v11 = vpop.permute.xlu1 %1322 }
 0xc30   :  { %v1325_v0 = vadd.f32 %v1323_v11, %v1315_v40 }
 0xc39   :  { %v1333_v41 = vpop.permute.xlu0 %1332 }
 0xc3a   :  { %v1335_v6 = vadd.f32 %v1333_v41, %v1325_v0 }
 0xc5c   :  { %v1374_v42 = vpop.permute.xlu1 %1373 }
 0xc5d   :  { %v1376_v43 = vsel %vm543_vm9, %v1335_v6, %v1374_v42 }
 0xc5e   :  { %1651 = vmatmul.mubr.msk.f32.vlgmr.msra.gmra.mrb[12].mxu0 %vm115_vm3, %v1376_v43 }
 0xc5f   :  { %1657 = vmatprep.mubr.msk.f32.mxu0 %vm1935_vm0, %v1936_v3  ;;  %1835 = vmatpush3.bf16.msra.mxu0 %v1834_v46  ;;  %v1458_v3 = vld [vmem:[%s2614_s1 + $0x7c0] ss:$0 sm:$0xff] }
 0xd31   :  { %v1451_v5 = vpop.f32.mrb[12].mxu0 }
 0xd32   :  { %v1452_v7 = vadd.f32 %v1451_v5, %v1381_v51  ;;  %v1652_v52 = vpop.f32.mrb[13].mxu0 }
 0xd34   :  { %v1455_v53 = vmax.f32 %v1452_v7, 0.0 }
 0xd36   :  { %1658 = vmatmul.mubr.msk.f32.vlgmr.msra.gmra.mrb[14].mxu0 %vm543_vm9, %v1455_v53 }
 0xe09   :  { %v1528_v57 = vpop.f32.mrb[14].mxu0 }
 0xe0a   :  { %v1529_v58 = vadd.f32 %v1528_v57, %v1458_v3  ;;  %v1659_v59 = vpop.f32.mrb[15].mxu0 }
 0xe0c   :  { %v1560_v60 = vmul.f32 -1.442695, %v1529_v58 }
 0xe0e   :  { %1930 = vpow2.f32 %v1560_v60 }
 0xe18   :  { %v1931_v61 = vpop.eup %1930 }
 0xe19   :  { %v1535_v62 = vadd.f32 1.0, %v1931_v61 }
 0xe1b   :  { %1932 = vrcp.f32 %v1535_v62 }
 0xe25   :  { %v1933_v1 = vpop.eup %1932 }
 0xe26   :  { %1539 = vst.msk [vmem:[%s2616_s2] sm:$0xff] %vm1538_vm11, %v1933_v1 }

</bundles_post_ra>
